<compile_context>
chip_gen: v6e
topology: v6e:2x2x1
jax: 0.10.0
libtpu: 0.0.40
codegen_flags: <defaults>
</compile_context>

<pallas_src>
import math

import jax
import jax.numpy as jnp
from jax import lax
from jax.experimental import pallas as pl
from jax.experimental.pallas import tpu as pltpu

# ----------------------------- mini-BERT config ------------------------------
VOCAB_SIZE = 100
TYPE_VOCAB = 2
MAX_POS = 16
HIDDEN = 32
N_LAYERS = 2
N_HEADS = 2
HEAD_DIM = HIDDEN // N_HEADS
INTERMEDIATE = 64
N_CLASSES = 4
LN_EPS = 1e-12
LANE_OUT = 128          # lane-dense classifier output block (review item)


# ------------------------------- fused kernel --------------------------------
def _layernorm(x, g, b):
    mean = jnp.mean(x, axis=-1, keepdims=True)
    var = jnp.mean((x - mean) ** 2, axis=-1, keepdims=True)
    return (x - mean) * lax.rsqrt(var + LN_EPS) * g + b


def _softmax_rows(s):
    m = jnp.max(s, axis=-1, keepdims=True)
    p = jnp.exp(s - m)
    denom = jnp.sum(p, axis=-1, keepdims=True)
    # EUP reciprocal: keeps the normalization off the VALU slot.
    return p * pl.reciprocal(denom, approx=True)


def _fused_bert_kernel(
    x_ref, mask_ref, emb_g_ref, emb_b_ref,
    qkv_w_ref, qkv_b_ref, o_w_ref, o_b_ref,
    ln1_g_ref, ln1_b_ref,
    ff1_w_ref, ff1_b_ref, ff2_w_ref, ff2_b_ref,
    ln2_g_ref, ln2_b_ref,
    pool_w_ref, pool_b_ref, out_w_ref, out_b_ref,
    logits_ref):
    x = x_ref[0]                      # (S, H)  one sequence per grid step
    mask = mask_ref[0]                # (1, S)  additive key-position mask
    seq = x.shape[0]

    # Embedding LayerNorm.
    x = _layernorm(x, emb_g_ref[...], emb_b_ref[...])

    for l in range(N_LAYERS):         # static unroll: N_LAYERS is tiny
        # --- fused QKV projection (attention scale pre-folded into Q cols) ---
        qkv = jnp.dot(x, qkv_w_ref[l], preferred_element_type=jnp.float32)
        qkv = qkv + qkv_b_ref[l]                                     # (S, 3H)

        # --- head split: one reshape + one transpose, then batched einsums ---
        qkv = jnp.swapaxes(qkv.reshape(seq, 3 * N_HEADS, HEAD_DIM), 0, 1)
        q = qkv[:N_HEADS]                                            # (NH, S, D)
        k = qkv[N_HEADS:2 * N_HEADS]
        v = qkv[2 * N_HEADS:]
        s = jnp.einsum('hqd,hkd->hqk', q, k,
                       preferred_element_type=jnp.float32) + mask[None]
        p = _softmax_rows(s)                                         # (NH, S, S)
        ctx = jnp.einsum('hqk,hkd->hqd', p, v,
                         preferred_element_type=jnp.float32)         # (NH, S, D)
        ctx = jnp.swapaxes(ctx, 0, 1).reshape(seq, HIDDEN)           # (S, H)

        # --- output projection + residual + LayerNorm (fused) -----------------
        attn = jnp.dot(ctx, o_w_ref[l], preferred_element_type=jnp.float32)
        x = _layernorm(x + attn + o_b_ref[l], ln1_g_ref[l], ln1_b_ref[l])

        # --- FFN + residual + LayerNorm (fused) -------------------------------
        h1 = jnp.dot(x, ff1_w_ref[l], preferred_element_type=jnp.float32)
        # TODO(synk): HF bert-base-cased uses exact erf GELU; the tanh
        # approximation keeps Mosaic lowering simple (tiny numerical drift).
        h1 = jax.nn.gelu(h1 + ff1_b_ref[l], approximate=True)
        h2 = jnp.dot(h1, ff2_w_ref[l], preferred_element_type=jnp.float32)
        x = _layernorm(x + h2 + ff2_b_ref[l], ln2_g_ref[l], ln2_b_ref[l])

    # --- pooler: CLS row -> Linear -> tanh; Dropout(p=0.3) is identity in eval.
    cls = x[0:1, :]                                                  # (1, H)
    pooled = jnp.tanh(
        jnp.dot(cls, pool_w_ref[...], preferred_element_type=jnp.float32)
        + pool_b_ref[...])
    logits = jnp.dot(pooled, out_w_ref[...],
                     preferred_element_type=jnp.float32) + out_b_ref[...]
    logits_ref[0] = logits.astype(logits_ref.dtype)                  # (1, 128)


# ------------------------------- model (glue) --------------------------------
def init_params(key):
    ks = iter(jax.random.split(key, 64))

    def nrm(shape):
        return 0.02 * jax.random.normal(next(ks), shape, dtype=jnp.float32)

    zeros = lambda s: jnp.zeros(s, jnp.float32)
    ones = lambda s: jnp.ones(s, jnp.float32)
    scale = 1.0 / math.sqrt(HEAD_DIM)

    qkv_w, qkv_b, o_w, o_b = [], [], [], []
    ln1_g, ln1_b, ff1_w, ff1_b = [], [], [], []
    ff2_w, ff2_b, ln2_g, ln2_b = [], [], [], []
    for _ in range(N_LAYERS):
        q_w, k_w, v_w = (nrm((HIDDEN, HIDDEN)) for _ in range(3))
        # One-time transform: fold 1/sqrt(HEAD_DIM) into the Q projection
        # (a nonzero Q bias would carry the same fold; it is zero here).
        qkv_w.append(jnp.concatenate([q_w * scale, k_w, v_w], axis=1))   # (H, 3H)
        qkv_b.append(zeros((1, 3 * HIDDEN)))
        o_w.append(nrm((HIDDEN, HIDDEN)));          o_b.append(zeros((1, HIDDEN)))
        ln1_g.append(ones((1, HIDDEN)));            ln1_b.append(zeros((1, HIDDEN)))
        ff1_w.append(nrm((HIDDEN, INTERMEDIATE)));  ff1_b.append(zeros((1, INTERMEDIATE)))
        ff2_w.append(nrm((INTERMEDIATE, HIDDEN)));  ff2_b.append(zeros((1, HIDDEN)))
        ln2_g.append(ones((1, HIDDEN)));            ln2_b.append(zeros((1, HIDDEN)))

    # Classifier head zero-padded to a lane-dense 128-wide output block.
    out_w = zeros((HIDDEN, LANE_OUT)).at[:, :N_CLASSES].set(
        nrm((HIDDEN, N_CLASSES)))
    out_b = zeros((1, LANE_OUT))

    stack = lambda xs: jnp.stack(xs, axis=0)
    return dict(
        word_emb=nrm((VOCAB_SIZE, HIDDEN)),
        pos_emb=nrm((MAX_POS, HIDDEN)),
        type_emb=nrm((TYPE_VOCAB, HIDDEN)),
        emb_ln_g=ones((1, HIDDEN)), emb_ln_b=zeros((1, HIDDEN)),
        qkv_w=stack(qkv_w), qkv_b=stack(qkv_b),
        o_w=stack(o_w), o_b=stack(o_b),
        ln1_g=stack(ln1_g), ln1_b=stack(ln1_b),
        ff1_w=stack(ff1_w), ff1_b=stack(ff1_b),
        ff2_w=stack(ff2_w), ff2_b=stack(ff2_b),
        ln2_g=stack(ln2_g), ln2_b=stack(ln2_b),
        pool_w=nrm((HIDDEN, HIDDEN)), pool_b=zeros((1, HIDDEN)),
        out_w=out_w, out_b=out_b,
    )


def news_classifier_forward(params, input_ids, attention_mask):
    B, S = input_ids.shape

    # Embedding gathers are host-side glue (plain JAX); everything after is the
    # single fused Pallas kernel.
    pos_ids = jnp.arange(S)
    tok_type = jnp.zeros((B, S), jnp.int32)
    x = (params["word_emb"][input_ids]
         + params["pos_emb"][pos_ids][None, :, :]
         + params["type_emb"][tok_type]).astype(jnp.float32)          # (B, S, H)

    # BERT extended attention mask: (1 - mask) * -10000 per key position.
    mask_bias = ((1.0 - attention_mask.astype(jnp.float32))
                 * -10000.0)[:, None, :]                              # (B, 1, S)

    p = params
    weights = (
        p["emb_ln_g"], p["emb_ln_b"],
        p["qkv_w"], p["qkv_b"], p["o_w"], p["o_b"],
        p["ln1_g"], p["ln1_b"],
        p["ff1_w"], p["ff1_b"], p["ff2_w"], p["ff2_b"],
        p["ln2_g"], p["ln2_b"],
        p["pool_w"], p["pool_b"], p["out_w"], p["out_b"],
    )

    def per_seq_spec(shape):          # leading batch dim split by the grid
        rest = len(shape) - 1
        return pl.BlockSpec((1,) + tuple(shape[1:]),
                            lambda i, _r=rest: (i,) + (0,) * _r)

    def shared_spec(shape):           # weights: same full block every step
        nd = len(shape)
        return pl.BlockSpec(tuple(shape), lambda i, _n=nd: (0,) * _n)

    # TODO(synk): at real BERT-base shapes add a layer grid axis with
    # per-layer bf16 weight BlockSpecs and set vmem_limit_bytes (v5e default
    # scoped VMEM is 16 MiB); f32 full-weight residency is only OK at toy size.
    out = pl.pallas_call(
        _fused_bert_kernel,
        out_shape=jax.ShapeDtypeStruct((B, 1, LANE_OUT), jnp.float32),
        grid=(B,),
        in_specs=[per_seq_spec(x.shape), per_seq_spec(mask_bias.shape)]
                 + [shared_spec(w.shape) for w in weights],
        out_specs=pl.BlockSpec((1, 1, LANE_OUT), lambda i: (i, 0, 0)),
        compiler_params=pltpu.CompilerParams(
            dimension_semantics=("parallel",)),
    )(x, mask_bias, *weights)
    return out.reshape(B, LANE_OUT)[:, :N_CLASSES]


# ----------------------------------- main -------------------------------------
if __name__ == "__main__":
    key = jax.random.PRNGKey(0)
    pkey, ikey = jax.random.split(key)
    params = init_params(pkey)

    B, S = 2, 8
    input_ids = jax.random.randint(ikey, (B, S), 0, VOCAB_SIZE, dtype=jnp.int32)
    attention_mask = jnp.ones((B, S), dtype=jnp.int32)

    logits = news_classifier_forward(params, input_ids, attention_mask)
    logits = jax.block_until_ready(logits)
    assert logits.shape == (B, N_CLASSES), logits.shape
    print("KERNEL_OK")
</pallas_src>

<mosaic_0001>
module attributes {stable_mosaic.version = 11 : i64} {
  func.func @_fused_bert_kernel(%arg0: i32, %arg1: memref<1x8x32xf32, #tpu.memory_space<vmem>>, %arg2: memref<1x1x8xf32, #tpu.memory_space<vmem>>, %arg3: memref<1x32xf32, #tpu.memory_space<vmem>>, %arg4: memref<1x32xf32, #tpu.memory_space<vmem>>, %arg5: memref<2x32x96xf32, #tpu.memory_space<vmem>>, %arg6: memref<2x1x96xf32, #tpu.memory_space<vmem>>, %arg7: memref<2x32x32xf32, #tpu.memory_space<vmem>>, %arg8: memref<2x1x32xf32, #tpu.memory_space<vmem>>, %arg9: memref<2x1x32xf32, #tpu.memory_space<vmem>>, %arg10: memref<2x1x32xf32, #tpu.memory_space<vmem>>, %arg11: memref<2x32x64xf32, #tpu.memory_space<vmem>>, %arg12: memref<2x1x64xf32, #tpu.memory_space<vmem>>, %arg13: memref<2x64x32xf32, #tpu.memory_space<vmem>>, %arg14: memref<2x1x32xf32, #tpu.memory_space<vmem>>, %arg15: memref<2x1x32xf32, #tpu.memory_space<vmem>>, %arg16: memref<2x1x32xf32, #tpu.memory_space<vmem>>, %arg17: memref<32x32xf32, #tpu.memory_space<vmem>>, %arg18: memref<1x32xf32, #tpu.memory_space<vmem>>, %arg19: memref<32x128xf32, #tpu.memory_space<vmem>>, %arg20: memref<1x128xf32, #tpu.memory_space<vmem>>, %arg21: memref<1x1x128xf32, #tpu.memory_space<vmem>>) attributes {dimension_semantics = [#tpu.dimension_semantics<parallel>], iteration_bounds = array<i64: 2>, scalar_prefetch = 0 : i64, scratch_operands = 0 : i64, tpu.core_type = #tpu.core_type<tc>, window_params = [{transform_indices = @transform_0, window_bounds = array<i64: 1, 8, 32>}, {transform_indices = @transform_1, window_bounds = array<i64: 1, 1, 8>}, {pipeline_mode = #tpu.pipeline_mode<synchronous>, transform_indices = @transform_2, window_bounds = array<i64: 1, 32>}, {pipeline_mode = #tpu.pipeline_mode<synchronous>, transform_indices = @transform_3, window_bounds = array<i64: 1, 32>}, {pipeline_mode = #tpu.pipeline_mode<synchronous>, transform_indices = @transform_4, window_bounds = array<i64: 2, 32, 96>}, {pipeline_mode = #tpu.pipeline_mode<synchronous>, transform_indices = @transform_5, window_bounds = array<i64: 2, 1, 96>}, {pipeline_mode = #tpu.pipeline_mode<synchronous>, transform_indices = @transform_6, window_bounds = array<i64: 2, 32, 32>}, {pipeline_mode = #tpu.pipeline_mode<synchronous>, transform_indices = @transform_7, window_bounds = array<i64: 2, 1, 32>}, {pipeline_mode = #tpu.pipeline_mode<synchronous>, transform_indices = @transform_8, window_bounds = array<i64: 2, 1, 32>}, {pipeline_mode = #tpu.pipeline_mode<synchronous>, transform_indices = @transform_9, window_bounds = array<i64: 2, 1, 32>}, {pipeline_mode = #tpu.pipeline_mode<synchronous>, transform_indices = @transform_10, window_bounds = array<i64: 2, 32, 64>}, {pipeline_mode = #tpu.pipeline_mode<synchronous>, transform_indices = @transform_11, window_bounds = array<i64: 2, 1, 64>}, {pipeline_mode = #tpu.pipeline_mode<synchronous>, transform_indices = @transform_12, window_bounds = array<i64: 2, 64, 32>}, {pipeline_mode = #tpu.pipeline_mode<synchronous>, transform_indices = @transform_13, window_bounds = array<i64: 2, 1, 32>}, {pipeline_mode = #tpu.pipeline_mode<synchronous>, transform_indices = @transform_14, window_bounds = array<i64: 2, 1, 32>}, {pipeline_mode = #tpu.pipeline_mode<synchronous>, transform_indices = @transform_15, window_bounds = array<i64: 2, 1, 32>}, {pipeline_mode = #tpu.pipeline_mode<synchronous>, transform_indices = @transform_16, window_bounds = array<i64: 32, 32>}, {pipeline_mode = #tpu.pipeline_mode<synchronous>, transform_indices = @transform_17, window_bounds = array<i64: 1, 32>}, {pipeline_mode = #tpu.pipeline_mode<synchronous>, transform_indices = @transform_18, window_bounds = array<i64: 32, 128>}, {pipeline_mode = #tpu.pipeline_mode<synchronous>, transform_indices = @transform_19, window_bounds = array<i64: 1, 128>}, {transform_indices = @transform_20, window_bounds = array<i64: 1, 1, 128>}]} {
    %c0 = arith.constant 0 : index
    %c0_0 = arith.constant 0 : index
    %c0_1 = arith.constant 0 : index
    %0 = vector.load %arg1[%c0, %c0_0, %c0_1] : memref<1x8x32xf32, #tpu.memory_space<vmem>>, vector<1x8x32xf32>
    %1 = vector.shape_cast %0 : vector<1x8x32xf32> to vector<8x32xf32>
    %c0_2 = arith.constant 0 : index
    %c0_3 = arith.constant 0 : index
    %c0_4 = arith.constant 0 : index
    %2 = vector.load %arg2[%c0_2, %c0_3, %c0_4] : memref<1x1x8xf32, #tpu.memory_space<vmem>>, vector<1x1x8xf32>
    %3 = vector.shape_cast %2 : vector<1x1x8xf32> to vector<1x8xf32>
    %c0_5 = arith.constant 0 : index
    %c0_6 = arith.constant 0 : index
    %4 = vector.load %arg3[%c0_5, %c0_6] : memref<1x32xf32, #tpu.memory_space<vmem>>, vector<1x32xf32>
    %c0_7 = arith.constant 0 : index
    %c0_8 = arith.constant 0 : index
    %5 = vector.load %arg4[%c0_7, %c0_8] : memref<1x32xf32, #tpu.memory_space<vmem>>, vector<1x32xf32>
    %cst = arith.constant dense<0.000000e+00> : vector<8xf32>
    %6 = vector.multi_reduction <add>, %1, %cst [1] : vector<8x32xf32> to vector<8xf32>
    %7 = vector.shape_cast %6 : vector<8xf32> to vector<8x1xf32>
    %cst_9 = arith.constant 3.200000e+01 : f32
    %8 = vector.broadcast %cst_9 : f32 to vector<8x1xf32>
    %9 = arith.divf %7, %8 : vector<8x1xf32>
    %10 = vector.broadcast %9 : vector<8x1xf32> to vector<8x32xf32>
    %11 = arith.subf %1, %10 : vector<8x32xf32>
    %12 = arith.mulf %11, %11 : vector<8x32xf32>
    %cst_10 = arith.constant dense<0.000000e+00> : vector<8xf32>
    %13 = vector.multi_reduction <add>, %12, %cst_10 [1] : vector<8x32xf32> to vector<8xf32>
    %14 = vector.shape_cast %13 : vector<8xf32> to vector<8x1xf32>
    %cst_11 = arith.constant 3.200000e+01 : f32
    %15 = vector.broadcast %cst_11 : f32 to vector<8x1xf32>
    %16 = arith.divf %14, %15 : vector<8x1xf32>
    %17 = vector.broadcast %9 : vector<8x1xf32> to vector<8x32xf32>
    %18 = arith.subf %1, %17 : vector<8x32xf32>
    %cst_12 = arith.constant 9.99999996E-13 : f32
    %19 = vector.broadcast %cst_12 : f32 to vector<8x1xf32>
    %20 = arith.addf %16, %19 : vector<8x1xf32>
    %21 = math.rsqrt %20 : vector<8x1xf32>
    %22 = vector.broadcast %21 : vector<8x1xf32> to vector<8x32xf32>
    %23 = arith.mulf %18, %22 : vector<8x32xf32>
    %24 = vector.broadcast %4 : vector<1x32xf32> to vector<8x32xf32>
    %25 = arith.mulf %23, %24 : vector<8x32xf32>
    %26 = vector.broadcast %5 : vector<1x32xf32> to vector<8x32xf32>
    %27 = arith.addf %25, %26 : vector<8x32xf32>
    %c0_13 = arith.constant 0 : index
    %c0_14 = arith.constant 0 : index
    %c0_15 = arith.constant 0 : index
    %28 = vector.load %arg5[%c0_13, %c0_14, %c0_15] : memref<2x32x96xf32, #tpu.memory_space<vmem>>, vector<1x32x96xf32>
    %29 = vector.shape_cast %28 : vector<1x32x96xf32> to vector<32x96xf32>
    %cst_16 = arith.constant dense<0.000000e+00> : vector<8x96xf32>
    %30 = tpu.matmul %27, %29, %cst_16 {dimension_numbers = #tpu.dot_dimension_numbers<[1], [0], [0], [1], [0, 0, 1, 1], [], []>} : vector<8x32xf32>, vector<32x96xf32>, vector<8x96xf32> -> vector<8x96xf32>
    %c0_17 = arith.constant 0 : index
    %c0_18 = arith.constant 0 : index
    %c0_19 = arith.constant 0 : index
    %31 = vector.load %arg6[%c0_17, %c0_18, %c0_19] : memref<2x1x96xf32, #tpu.memory_space<vmem>>, vector<1x1x96xf32>
    %32 = vector.shape_cast %31 : vector<1x1x96xf32> to vector<1x96xf32>
    %33 = vector.broadcast %32 : vector<1x96xf32> to vector<8x96xf32>
    %34 = arith.addf %30, %33 : vector<8x96xf32>
    %35 = vector.shape_cast %34 : vector<8x96xf32> to vector<8x6x16xf32>
    %36 = tpu.transpose %35, [1, 0, 2] : vector<8x6x16xf32> -> vector<6x8x16xf32>
    %37 = vector.extract_strided_slice %36 {offsets = [0, 0, 0], sizes = [2, 8, 16], strides = [1, 1, 1]} : vector<6x8x16xf32> to vector<2x8x16xf32>
    %38 = vector.extract_strided_slice %36 {offsets = [2, 0, 0], sizes = [2, 8, 16], strides = [1, 1, 1]} : vector<6x8x16xf32> to vector<2x8x16xf32>
    %39 = vector.extract_strided_slice %36 {offsets = [4, 0, 0], sizes = [2, 8, 16], strides = [1, 1, 1]} : vector<6x8x16xf32> to vector<2x8x16xf32>
    "tpu.trace_start"() <{level = 10 : i32, message = "hqd,hkd->hqk"}> : () -> ()
    %cst_20 = arith.constant dense<0.000000e+00> : vector<2x8x8xf32>
    %40 = tpu.matmul %37, %38, %cst_20 {dimension_numbers = #tpu.dot_dimension_numbers<[2], [2], [1], [1], [0, 0, 0, 1, 1, 1], [0], [0]>} : vector<2x8x16xf32>, vector<2x8x16xf32>, vector<2x8x8xf32> -> vector<2x8x8xf32>
    "tpu.trace_stop"() : () -> ()
    %41 = vector.shape_cast %3 : vector<1x8xf32> to vector<1x1x8xf32>
    %42 = vector.broadcast %41 : vector<1x1x8xf32> to vector<2x8x8xf32>
    %43 = arith.addf %40, %42 : vector<2x8x8xf32>
    %cst_21 = arith.constant dense<0xFF800000> : vector<2x8xf32>
    %44 = vector.multi_reduction <maximumf>, %43, %cst_21 [2] : vector<2x8x8xf32> to vector<2x8xf32>
    %45 = vector.shape_cast %44 : vector<2x8xf32> to vector<2x8x1xf32>
    %46 = vector.broadcast %45 : vector<2x8x1xf32> to vector<2x8x8xf32>
    %47 = arith.subf %43, %46 : vector<2x8x8xf32>
    %48 = math.exp %47 : vector<2x8x8xf32>
    %cst_22 = arith.constant dense<0.000000e+00> : vector<2x8xf32>
    %49 = vector.multi_reduction <add>, %48, %cst_22 [2] : vector<2x8x8xf32> to vector<2x8xf32>
    %50 = vector.shape_cast %49 : vector<2x8xf32> to vector<2x8x1xf32>
    %51 = tpu.reciprocal %50 {approx = true} : vector<2x8x1xf32> -> vector<2x8x1xf32>
    %52 = vector.broadcast %51 : vector<2x8x1xf32> to vector<2x8x8xf32>
    %53 = arith.mulf %48, %52 : vector<2x8x8xf32>
    "tpu.trace_start"() <{level = 10 : i32, message = "hqk,hkd->hqd"}> : () -> ()
    %cst_23 = arith.constant dense<0.000000e+00> : vector<2x8x16xf32>
    %54 = tpu.matmul %53, %39, %cst_23 {dimension_numbers = #tpu.dot_dimension_numbers<[2], [1], [1], [2], [0, 0, 0, 1, 1, 2], [0], [0]>} : vector<2x8x8xf32>, vector<2x8x16xf32>, vector<2x8x16xf32> -> vector<2x8x16xf32>
    "tpu.trace_stop"() : () -> ()
    %55 = tpu.transpose %54, [1, 0, 2] : vector<2x8x16xf32> -> vector<8x2x16xf32>
    %56 = vector.shape_cast %55 : vector<8x2x16xf32> to vector<8x32xf32>
    %c0_24 = arith.constant 0 : index
    %c0_25 = arith.constant 0 : index
    %c0_26 = arith.constant 0 : index
    %57 = vector.load %arg7[%c0_24, %c0_25, %c0_26] : memref<2x32x32xf32, #tpu.memory_space<vmem>>, vector<1x32x32xf32>
    %58 = vector.shape_cast %57 : vector<1x32x32xf32> to vector<32x32xf32>
    %cst_27 = arith.constant dense<0.000000e+00> : vector<8x32xf32>
    %59 = tpu.matmul %56, %58, %cst_27 {dimension_numbers = #tpu.dot_dimension_numbers<[1], [0], [0], [1], [0, 0, 1, 1], [], []>} : vector<8x32xf32>, vector<32x32xf32>, vector<8x32xf32> -> vector<8x32xf32>
    %60 = arith.addf %27, %59 : vector<8x32xf32>
    %c0_28 = arith.constant 0 : index
    %c0_29 = arith.constant 0 : index
    %c0_30 = arith.constant 0 : index
    %61 = vector.load %arg8[%c0_28, %c0_29, %c0_30] : memref<2x1x32xf32, #tpu.memory_space<vmem>>, vector<1x1x32xf32>
    %62 = vector.shape_cast %61 : vector<1x1x32xf32> to vector<1x32xf32>
    %63 = vector.broadcast %62 : vector<1x32xf32> to vector<8x32xf32>
    %64 = arith.addf %60, %63 : vector<8x32xf32>
    %c0_31 = arith.constant 0 : index
    %c0_32 = arith.constant 0 : index
    %c0_33 = arith.constant 0 : index
    %65 = vector.load %arg9[%c0_31, %c0_32, %c0_33] : memref<2x1x32xf32, #tpu.memory_space<vmem>>, vector<1x1x32xf32>
    %66 = vector.shape_cast %65 : vector<1x1x32xf32> to vector<1x32xf32>
    %c0_34 = arith.constant 0 : index
    %c0_35 = arith.constant 0 : index
    %c0_36 = arith.constant 0 : index
    %67 = vector.load %arg10[%c0_34, %c0_35, %c0_36] : memref<2x1x32xf32, #tpu.memory_space<vmem>>, vector<1x1x32xf32>
    %68 = vector.shape_cast %67 : vector<1x1x32xf32> to vector<1x32xf32>
    %cst_37 = arith.constant dense<0.000000e+00> : vector<8xf32>
    %69 = vector.multi_reduction <add>, %64, %cst_37 [1] : vector<8x32xf32> to vector<8xf32>
    %70 = vector.shape_cast %69 : vector<8xf32> to vector<8x1xf32>
    %cst_38 = arith.constant 3.200000e+01 : f32
    %71 = vector.broadcast %cst_38 : f32 to vector<8x1xf32>
    %72 = arith.divf %70, %71 : vector<8x1xf32>
    %73 = vector.broadcast %72 : vector<8x1xf32> to vector<8x32xf32>
    %74 = arith.subf %64, %73 : vector<8x32xf32>
    %75 = arith.mulf %74, %74 : vector<8x32xf32>
    %cst_39 = arith.constant dense<0.000000e+00> : vector<8xf32>
    %76 = vector.multi_reduction <add>, %75, %cst_39 [1] : vector<8x32xf32> to vector<8xf32>
    %77 = vector.shape_cast %76 : vector<8xf32> to vector<8x1xf32>
    %cst_40 = arith.constant 3.200000e+01 : f32
    %78 = vector.broadcast %cst_40 : f32 to vector<8x1xf32>
    %79 = arith.divf %77, %78 : vector<8x1xf32>
    %80 = vector.broadcast %72 : vector<8x1xf32> to vector<8x32xf32>
    %81 = arith.subf %64, %80 : vector<8x32xf32>
    %cst_41 = arith.constant 9.99999996E-13 : f32
    %82 = vector.broadcast %cst_41 : f32 to vector<8x1xf32>
    %83 = arith.addf %79, %82 : vector<8x1xf32>
    %84 = math.rsqrt %83 : vector<8x1xf32>
    %85 = vector.broadcast %84 : vector<8x1xf32> to vector<8x32xf32>
    %86 = arith.mulf %81, %85 : vector<8x32xf32>
    %87 = vector.broadcast %66 : vector<1x32xf32> to vector<8x32xf32>
    %88 = arith.mulf %86, %87 : vector<8x32xf32>
    %89 = vector.broadcast %68 : vector<1x32xf32> to vector<8x32xf32>
    %90 = arith.addf %88, %89 : vector<8x32xf32>
    %c0_42 = arith.constant 0 : index
    %c0_43 = arith.constant 0 : index
    %c0_44 = arith.constant 0 : index
    %91 = vector.load %arg11[%c0_42, %c0_43, %c0_44] : memref<2x32x64xf32, #tpu.memory_space<vmem>>, vector<1x32x64xf32>
    %92 = vector.shape_cast %91 : vector<1x32x64xf32> to vector<32x64xf32>
    %cst_45 = arith.constant dense<0.000000e+00> : vector<8x64xf32>
    %93 = tpu.matmul %90, %92, %cst_45 {dimension_numbers = #tpu.dot_dimension_numbers<[1], [0], [0], [1], [0, 0, 1, 1], [], []>} : vector<8x32xf32>, vector<32x64xf32>, vector<8x64xf32> -> vector<8x64xf32>
    %c0_46 = arith.constant 0 : index
    %c0_47 = arith.constant 0 : index
    %c0_48 = arith.constant 0 : index
    %94 = vector.load %arg12[%c0_46, %c0_47, %c0_48] : memref<2x1x64xf32, #tpu.memory_space<vmem>>, vector<1x1x64xf32>
    %95 = vector.shape_cast %94 : vector<1x1x64xf32> to vector<1x64xf32>
    %96 = vector.broadcast %95 : vector<1x64xf32> to vector<8x64xf32>
    %97 = arith.addf %93, %96 : vector<8x64xf32>
    %98 = arith.mulf %97, %97 : vector<8x64xf32>
    %99 = arith.mulf %97, %98 : vector<8x64xf32>
    %cst_49 = arith.constant 4.471500e-02 : f32
    %100 = vector.broadcast %cst_49 : f32 to vector<8x64xf32>
    %101 = arith.mulf %100, %99 : vector<8x64xf32>
    %102 = arith.addf %97, %101 : vector<8x64xf32>
    %cst_50 = arith.constant 0.797884583 : f32
    %103 = vector.broadcast %cst_50 : f32 to vector<8x64xf32>
    %104 = arith.mulf %103, %102 : vector<8x64xf32>
    %105 = math.tanh %104 : vector<8x64xf32>
    %cst_51 = arith.constant 1.000000e+00 : f32
    %106 = vector.broadcast %cst_51 : f32 to vector<8x64xf32>
    %107 = arith.addf %106, %105 : vector<8x64xf32>
    %cst_52 = arith.constant 5.000000e-01 : f32
    %108 = vector.broadcast %cst_52 : f32 to vector<8x64xf32>
    %109 = arith.mulf %108, %107 : vector<8x64xf32>
    %110 = arith.mulf %97, %109 : vector<8x64xf32>
    %c0_53 = arith.constant 0 : index
    %c0_54 = arith.constant 0 : index
    %c0_55 = arith.constant 0 : index
    %111 = vector.load %arg13[%c0_53, %c0_54, %c0_55] : memref<2x64x32xf32, #tpu.memory_space<vmem>>, vector<1x64x32xf32>
    %112 = vector.shape_cast %111 : vector<1x64x32xf32> to vector<64x32xf32>
    %cst_56 = arith.constant dense<0.000000e+00> : vector<8x32xf32>
    %113 = tpu.matmul %110, %112, %cst_56 {dimension_numbers = #tpu.dot_dimension_numbers<[1], [0], [0], [1], [0, 0, 1, 1], [], []>} : vector<8x64xf32>, vector<64x32xf32>, vector<8x32xf32> -> vector<8x32xf32>
    %114 = arith.addf %90, %113 : vector<8x32xf32>
    %c0_57 = arith.constant 0 : index
    %c0_58 = arith.constant 0 : index
    %c0_59 = arith.constant 0 : index
    %115 = vector.load %arg14[%c0_57, %c0_58, %c0_59] : memref<2x1x32xf32, #tpu.memory_space<vmem>>, vector<1x1x32xf32>
    %116 = vector.shape_cast %115 : vector<1x1x32xf32> to vector<1x32xf32>
    %117 = vector.broadcast %116 : vector<1x32xf32> to vector<8x32xf32>
    %118 = arith.addf %114, %117 : vector<8x32xf32>
    %c0_60 = arith.constant 0 : index
    %c0_61 = arith.constant 0 : index
    %c0_62 = arith.constant 0 : index
    %119 = vector.load %arg15[%c0_60, %c0_61, %c0_62] : memref<2x1x32xf32, #tpu.memory_space<vmem>>, vector<1x1x32xf32>
    %120 = vector.shape_cast %119 : vector<1x1x32xf32> to vector<1x32xf32>
    %c0_63 = arith.constant 0 : index
    %c0_64 = arith.constant 0 : index
    %c0_65 = arith.constant 0 : index
    %121 = vector.load %arg16[%c0_63, %c0_64, %c0_65] : memref<2x1x32xf32, #tpu.memory_space<vmem>>, vector<1x1x32xf32>
    %122 = vector.shape_cast %121 : vector<1x1x32xf32> to vector<1x32xf32>
    %cst_66 = arith.constant dense<0.000000e+00> : vector<8xf32>
    %123 = vector.multi_reduction <add>, %118, %cst_66 [1] : vector<8x32xf32> to vector<8xf32>
    %124 = vector.shape_cast %123 : vector<8xf32> to vector<8x1xf32>
    %cst_67 = arith.constant 3.200000e+01 : f32
    %125 = vector.broadcast %cst_67 : f32 to vector<8x1xf32>
    %126 = arith.divf %124, %125 : vector<8x1xf32>
    %127 = vector.broadcast %126 : vector<8x1xf32> to vector<8x32xf32>
    %128 = arith.subf %118, %127 : vector<8x32xf32>
    %129 = arith.mulf %128, %128 : vector<8x32xf32>
    %cst_68 = arith.constant dense<0.000000e+00> : vector<8xf32>
    %130 = vector.multi_reduction <add>, %129, %cst_68 [1] : vector<8x32xf32> to vector<8xf32>
    %131 = vector.shape_cast %130 : vector<8xf32> to vector<8x1xf32>
    %cst_69 = arith.constant 3.200000e+01 : f32
    %132 = vector.broadcast %cst_69 : f32 to vector<8x1xf32>
    %133 = arith.divf %131, %132 : vector<8x1xf32>
    %134 = vector.broadcast %126 : vector<8x1xf32> to vector<8x32xf32>
    %135 = arith.subf %118, %134 : vector<8x32xf32>
    %cst_70 = arith.constant 9.99999996E-13 : f32
    %136 = vector.broadcast %cst_70 : f32 to vector<8x1xf32>
    %137 = arith.addf %133, %136 : vector<8x1xf32>
    %138 = math.rsqrt %137 : vector<8x1xf32>
    %139 = vector.broadcast %138 : vector<8x1xf32> to vector<8x32xf32>
    %140 = arith.mulf %135, %139 : vector<8x32xf32>
    %141 = vector.broadcast %120 : vector<1x32xf32> to vector<8x32xf32>
    %142 = arith.mulf %140, %141 : vector<8x32xf32>
    %143 = vector.broadcast %122 : vector<1x32xf32> to vector<8x32xf32>
    %144 = arith.addf %142, %143 : vector<8x32xf32>
    %c1 = arith.constant 1 : index
    %c0_71 = arith.constant 0 : index
    %c0_72 = arith.constant 0 : index
    %145 = vector.load %arg5[%c1, %c0_71, %c0_72] : memref<2x32x96xf32, #tpu.memory_space<vmem>>, vector<1x32x96xf32>
    %146 = vector.shape_cast %145 : vector<1x32x96xf32> to vector<32x96xf32>
    %cst_73 = arith.constant dense<0.000000e+00> : vector<8x96xf32>
    %147 = tpu.matmul %144, %146, %cst_73 {dimension_numbers = #tpu.dot_dimension_numbers<[1], [0], [0], [1], [0, 0, 1, 1], [], []>} : vector<8x32xf32>, vector<32x96xf32>, vector<8x96xf32> -> vector<8x96xf32>
    %c1_74 = arith.constant 1 : index
    %c0_75 = arith.constant 0 : index
    %c0_76 = arith.constant 0 : index
    %148 = vector.load %arg6[%c1_74, %c0_75, %c0_76] : memref<2x1x96xf32, #tpu.memory_space<vmem>>, vector<1x1x96xf32>
    %149 = vector.shape_cast %148 : vector<1x1x96xf32> to vector<1x96xf32>
    %150 = vector.broadcast %149 : vector<1x96xf32> to vector<8x96xf32>
    %151 = arith.addf %147, %150 : vector<8x96xf32>
    %152 = vector.shape_cast %151 : vector<8x96xf32> to vector<8x6x16xf32>
    %153 = tpu.transpose %152, [1, 0, 2] : vector<8x6x16xf32> -> vector<6x8x16xf32>
    %154 = vector.extract_strided_slice %153 {offsets = [0, 0, 0], sizes = [2, 8, 16], strides = [1, 1, 1]} : vector<6x8x16xf32> to vector<2x8x16xf32>
    %155 = vector.extract_strided_slice %153 {offsets = [2, 0, 0], sizes = [2, 8, 16], strides = [1, 1, 1]} : vector<6x8x16xf32> to vector<2x8x16xf32>
    %156 = vector.extract_strided_slice %153 {offsets = [4, 0, 0], sizes = [2, 8, 16], strides = [1, 1, 1]} : vector<6x8x16xf32> to vector<2x8x16xf32>
    "tpu.trace_start"() <{level = 10 : i32, message = "hqd,hkd->hqk"}> : () -> ()
    %cst_77 = arith.constant dense<0.000000e+00> : vector<2x8x8xf32>
    %157 = tpu.matmul %154, %155, %cst_77 {dimension_numbers = #tpu.dot_dimension_numbers<[2], [2], [1], [1], [0, 0, 0, 1, 1, 1], [0], [0]>} : vector<2x8x16xf32>, vector<2x8x16xf32>, vector<2x8x8xf32> -> vector<2x8x8xf32>
    "tpu.trace_stop"() : () -> ()
    %158 = vector.shape_cast %3 : vector<1x8xf32> to vector<1x1x8xf32>
    %159 = vector.broadcast %158 : vector<1x1x8xf32> to vector<2x8x8xf32>
    %160 = arith.addf %157, %159 : vector<2x8x8xf32>
    %cst_78 = arith.constant dense<0xFF800000> : vector<2x8xf32>
    %161 = vector.multi_reduction <maximumf>, %160, %cst_78 [2] : vector<2x8x8xf32> to vector<2x8xf32>
    %162 = vector.shape_cast %161 : vector<2x8xf32> to vector<2x8x1xf32>
    %163 = vector.broadcast %162 : vector<2x8x1xf32> to vector<2x8x8xf32>
    %164 = arith.subf %160, %163 : vector<2x8x8xf32>
    %165 = math.exp %164 : vector<2x8x8xf32>
    %cst_79 = arith.constant dense<0.000000e+00> : vector<2x8xf32>
    %166 = vector.multi_reduction <add>, %165, %cst_79 [2] : vector<2x8x8xf32> to vector<2x8xf32>
    %167 = vector.shape_cast %166 : vector<2x8xf32> to vector<2x8x1xf32>
    %168 = tpu.reciprocal %167 {approx = true} : vector<2x8x1xf32> -> vector<2x8x1xf32>
    %169 = vector.broadcast %168 : vector<2x8x1xf32> to vector<2x8x8xf32>
    %170 = arith.mulf %165, %169 : vector<2x8x8xf32>
    "tpu.trace_start"() <{level = 10 : i32, message = "hqk,hkd->hqd"}> : () -> ()
    %cst_80 = arith.constant dense<0.000000e+00> : vector<2x8x16xf32>
    %171 = tpu.matmul %170, %156, %cst_80 {dimension_numbers = #tpu.dot_dimension_numbers<[2], [1], [1], [2], [0, 0, 0, 1, 1, 2], [0], [0]>} : vector<2x8x8xf32>, vector<2x8x16xf32>, vector<2x8x16xf32> -> vector<2x8x16xf32>
    "tpu.trace_stop"() : () -> ()
    %172 = tpu.transpose %171, [1, 0, 2] : vector<2x8x16xf32> -> vector<8x2x16xf32>
    %173 = vector.shape_cast %172 : vector<8x2x16xf32> to vector<8x32xf32>
    %c1_81 = arith.constant 1 : index
    %c0_82 = arith.constant 0 : index
    %c0_83 = arith.constant 0 : index
    %174 = vector.load %arg7[%c1_81, %c0_82, %c0_83] : memref<2x32x32xf32, #tpu.memory_space<vmem>>, vector<1x32x32xf32>
    %175 = vector.shape_cast %174 : vector<1x32x32xf32> to vector<32x32xf32>
    %cst_84 = arith.constant dense<0.000000e+00> : vector<8x32xf32>
    %176 = tpu.matmul %173, %175, %cst_84 {dimension_numbers = #tpu.dot_dimension_numbers<[1], [0], [0], [1], [0, 0, 1, 1], [], []>} : vector<8x32xf32>, vector<32x32xf32>, vector<8x32xf32> -> vector<8x32xf32>
    %177 = arith.addf %144, %176 : vector<8x32xf32>
    %c1_85 = arith.constant 1 : index
    %c0_86 = arith.constant 0 : index
    %c0_87 = arith.constant 0 : index
    %178 = vector.load %arg8[%c1_85, %c0_86, %c0_87] : memref<2x1x32xf32, #tpu.memory_space<vmem>>, vector<1x1x32xf32>
    %179 = vector.shape_cast %178 : vector<1x1x32xf32> to vector<1x32xf32>
    %180 = vector.broadcast %179 : vector<1x32xf32> to vector<8x32xf32>
    %181 = arith.addf %177, %180 : vector<8x32xf32>
    %c1_88 = arith.constant 1 : index
    %c0_89 = arith.constant 0 : index
    %c0_90 = arith.constant 0 : index
    %182 = vector.load %arg9[%c1_88, %c0_89, %c0_90] : memref<2x1x32xf32, #tpu.memory_space<vmem>>, vector<1x1x32xf32>
    %183 = vector.shape_cast %182 : vector<1x1x32xf32> to vector<1x32xf32>
    %c1_91 = arith.constant 1 : index
    %c0_92 = arith.constant 0 : index
    %c0_93 = arith.constant 0 : index
    %184 = vector.load %arg10[%c1_91, %c0_92, %c0_93] : memref<2x1x32xf32, #tpu.memory_space<vmem>>, vector<1x1x32xf32>
    %185 = vector.shape_cast %184 : vector<1x1x32xf32> to vector<1x32xf32>
    %cst_94 = arith.constant dense<0.000000e+00> : vector<8xf32>
    %186 = vector.multi_reduction <add>, %181, %cst_94 [1] : vector<8x32xf32> to vector<8xf32>
    %187 = vector.shape_cast %186 : vector<8xf32> to vector<8x1xf32>
    %cst_95 = arith.constant 3.200000e+01 : f32
    %188 = vector.broadcast %cst_95 : f32 to vector<8x1xf32>
    %189 = arith.divf %187, %188 : vector<8x1xf32>
    %190 = vector.broadcast %189 : vector<8x1xf32> to vector<8x32xf32>
    %191 = arith.subf %181, %190 : vector<8x32xf32>
    %192 = arith.mulf %191, %191 : vector<8x32xf32>
    %cst_96 = arith.constant dense<0.000000e+00> : vector<8xf32>
    %193 = vector.multi_reduction <add>, %192, %cst_96 [1] : vector<8x32xf32> to vector<8xf32>
    %194 = vector.shape_cast %193 : vector<8xf32> to vector<8x1xf32>
    %cst_97 = arith.constant 3.200000e+01 : f32
    %195 = vector.broadcast %cst_97 : f32 to vector<8x1xf32>
    %196 = arith.divf %194, %195 : vector<8x1xf32>
    %197 = vector.broadcast %189 : vector<8x1xf32> to vector<8x32xf32>
    %198 = arith.subf %181, %197 : vector<8x32xf32>
    %cst_98 = arith.constant 9.99999996E-13 : f32
    %199 = vector.broadcast %cst_98 : f32 to vector<8x1xf32>
    %200 = arith.addf %196, %199 : vector<8x1xf32>
    %201 = math.rsqrt %200 : vector<8x1xf32>
    %202 = vector.broadcast %201 : vector<8x1xf32> to vector<8x32xf32>
    %203 = arith.mulf %198, %202 : vector<8x32xf32>
    %204 = vector.broadcast %183 : vector<1x32xf32> to vector<8x32xf32>
    %205 = arith.mulf %203, %204 : vector<8x32xf32>
    %206 = vector.broadcast %185 : vector<1x32xf32> to vector<8x32xf32>
    %207 = arith.addf %205, %206 : vector<8x32xf32>
    %c1_99 = arith.constant 1 : index
    %c0_100 = arith.constant 0 : index
    %c0_101 = arith.constant 0 : index
    %208 = vector.load %arg11[%c1_99, %c0_100, %c0_101] : memref<2x32x64xf32, #tpu.memory_space<vmem>>, vector<1x32x64xf32>
    %209 = vector.shape_cast %208 : vector<1x32x64xf32> to vector<32x64xf32>
    %cst_102 = arith.constant dense<0.000000e+00> : vector<8x64xf32>
    %210 = tpu.matmul %207, %209, %cst_102 {dimension_numbers = #tpu.dot_dimension_numbers<[1], [0], [0], [1], [0, 0, 1, 1], [], []>} : vector<8x32xf32>, vector<32x64xf32>, vector<8x64xf32> -> vector<8x64xf32>
    %c1_103 = arith.constant 1 : index
    %c0_104 = arith.constant 0 : index
    %c0_105 = arith.constant 0 : index
    %211 = vector.load %arg12[%c1_103, %c0_104, %c0_105] : memref<2x1x64xf32, #tpu.memory_space<vmem>>, vector<1x1x64xf32>
    %212 = vector.shape_cast %211 : vector<1x1x64xf32> to vector<1x64xf32>
    %213 = vector.broadcast %212 : vector<1x64xf32> to vector<8x64xf32>
    %214 = arith.addf %210, %213 : vector<8x64xf32>
    %215 = arith.mulf %214, %214 : vector<8x64xf32>
    %216 = arith.mulf %214, %215 : vector<8x64xf32>
    %cst_106 = arith.constant 4.471500e-02 : f32
    %217 = vector.broadcast %cst_106 : f32 to vector<8x64xf32>
    %218 = arith.mulf %217, %216 : vector<8x64xf32>
    %219 = arith.addf %214, %218 : vector<8x64xf32>
    %cst_107 = arith.constant 0.797884583 : f32
    %220 = vector.broadcast %cst_107 : f32 to vector<8x64xf32>
    %221 = arith.mulf %220, %219 : vector<8x64xf32>
    %222 = math.tanh %221 : vector<8x64xf32>
    %cst_108 = arith.constant 1.000000e+00 : f32
    %223 = vector.broadcast %cst_108 : f32 to vector<8x64xf32>
    %224 = arith.addf %223, %222 : vector<8x64xf32>
    %cst_109 = arith.constant 5.000000e-01 : f32
    %225 = vector.broadcast %cst_109 : f32 to vector<8x64xf32>
    %226 = arith.mulf %225, %224 : vector<8x64xf32>
    %227 = arith.mulf %214, %226 : vector<8x64xf32>
    %c1_110 = arith.constant 1 : index
    %c0_111 = arith.constant 0 : index
    %c0_112 = arith.constant 0 : index
    %228 = vector.load %arg13[%c1_110, %c0_111, %c0_112] : memref<2x64x32xf32, #tpu.memory_space<vmem>>, vector<1x64x32xf32>
    %229 = vector.shape_cast %228 : vector<1x64x32xf32> to vector<64x32xf32>
    %cst_113 = arith.constant dense<0.000000e+00> : vector<8x32xf32>
    %230 = tpu.matmul %227, %229, %cst_113 {dimension_numbers = #tpu.dot_dimension_numbers<[1], [0], [0], [1], [0, 0, 1, 1], [], []>} : vector<8x64xf32>, vector<64x32xf32>, vector<8x32xf32> -> vector<8x32xf32>
    %231 = arith.addf %207, %230 : vector<8x32xf32>
    %c1_114 = arith.constant 1 : index
    %c0_115 = arith.constant 0 : index
    %c0_116 = arith.constant 0 : index
    %232 = vector.load %arg14[%c1_114, %c0_115, %c0_116] : memref<2x1x32xf32, #tpu.memory_space<vmem>>, vector<1x1x32xf32>
    %233 = vector.shape_cast %232 : vector<1x1x32xf32> to vector<1x32xf32>
    %234 = vector.broadcast %233 : vector<1x32xf32> to vector<8x32xf32>
    %235 = arith.addf %231, %234 : vector<8x32xf32>
    %c1_117 = arith.constant 1 : index
    %c0_118 = arith.constant 0 : index
    %c0_119 = arith.constant 0 : index
    %236 = vector.load %arg15[%c1_117, %c0_118, %c0_119] : memref<2x1x32xf32, #tpu.memory_space<vmem>>, vector<1x1x32xf32>
    %237 = vector.shape_cast %236 : vector<1x1x32xf32> to vector<1x32xf32>
    %c1_120 = arith.constant 1 : index
    %c0_121 = arith.constant 0 : index
    %c0_122 = arith.constant 0 : index
    %238 = vector.load %arg16[%c1_120, %c0_121, %c0_122] : memref<2x1x32xf32, #tpu.memory_space<vmem>>, vector<1x1x32xf32>
    %239 = vector.shape_cast %238 : vector<1x1x32xf32> to vector<1x32xf32>
    %cst_123 = arith.constant dense<0.000000e+00> : vector<8xf32>
    %240 = vector.multi_reduction <add>, %235, %cst_123 [1] : vector<8x32xf32> to vector<8xf32>
    %241 = vector.shape_cast %240 : vector<8xf32> to vector<8x1xf32>
    %cst_124 = arith.constant 3.200000e+01 : f32
    %242 = vector.broadcast %cst_124 : f32 to vector<8x1xf32>
    %243 = arith.divf %241, %242 : vector<8x1xf32>
    %244 = vector.broadcast %243 : vector<8x1xf32> to vector<8x32xf32>
    %245 = arith.subf %235, %244 : vector<8x32xf32>
    %246 = arith.mulf %245, %245 : vector<8x32xf32>
    %cst_125 = arith.constant dense<0.000000e+00> : vector<8xf32>
    %247 = vector.multi_reduction <add>, %246, %cst_125 [1] : vector<8x32xf32> to vector<8xf32>
    %248 = vector.shape_cast %247 : vector<8xf32> to vector<8x1xf32>
    %cst_126 = arith.constant 3.200000e+01 : f32
    %249 = vector.broadcast %cst_126 : f32 to vector<8x1xf32>
    %250 = arith.divf %248, %249 : vector<8x1xf32>
    %251 = vector.broadcast %243 : vector<8x1xf32> to vector<8x32xf32>
    %252 = arith.subf %235, %251 : vector<8x32xf32>
    %cst_127 = arith.constant 9.99999996E-13 : f32
    %253 = vector.broadcast %cst_127 : f32 to vector<8x1xf32>
    %254 = arith.addf %250, %253 : vector<8x1xf32>
    %255 = math.rsqrt %254 : vector<8x1xf32>
    %256 = vector.broadcast %255 : vector<8x1xf32> to vector<8x32xf32>
    %257 = arith.mulf %252, %256 : vector<8x32xf32>
    %258 = vector.broadcast %237 : vector<1x32xf32> to vector<8x32xf32>
    %259 = arith.mulf %257, %258 : vector<8x32xf32>
    %260 = vector.broadcast %239 : vector<1x32xf32> to vector<8x32xf32>
    %261 = arith.addf %259, %260 : vector<8x32xf32>
    %262 = vector.extract_strided_slice %261 {offsets = [0, 0], sizes = [1, 32], strides = [1, 1]} : vector<8x32xf32> to vector<1x32xf32>
    %c0_128 = arith.constant 0 : index
    %c0_129 = arith.constant 0 : index
    %263 = vector.load %arg17[%c0_128, %c0_129] : memref<32x32xf32, #tpu.memory_space<vmem>>, vector<32x32xf32>
    %cst_130 = arith.constant dense<0.000000e+00> : vector<1x32xf32>
    %264 = tpu.matmul %262, %263, %cst_130 {dimension_numbers = #tpu.dot_dimension_numbers<[1], [0], [0], [1], [0, 0, 1, 1], [], []>} : vector<1x32xf32>, vector<32x32xf32>, vector<1x32xf32> -> vector<1x32xf32>
    %c0_131 = arith.constant 0 : index
    %c0_132 = arith.constant 0 : index
    %265 = vector.load %arg18[%c0_131, %c0_132] : memref<1x32xf32, #tpu.memory_space<vmem>>, vector<1x32xf32>
    %266 = arith.addf %264, %265 : vector<1x32xf32>
    %267 = math.tanh %266 : vector<1x32xf32>
    %c0_133 = arith.constant 0 : index
    %c0_134 = arith.constant 0 : index
    %268 = vector.load %arg19[%c0_133, %c0_134] : memref<32x128xf32, #tpu.memory_space<vmem>>, vector<32x128xf32>
    %cst_135 = arith.constant dense<0.000000e+00> : vector<1x128xf32>
    %269 = tpu.matmul %267, %268, %cst_135 {dimension_numbers = #tpu.dot_dimension_numbers<[1], [0], [0], [1], [0, 0, 1, 1], [], []>} : vector<1x32xf32>, vector<32x128xf32>, vector<1x128xf32> -> vector<1x128xf32>
    %c0_136 = arith.constant 0 : index
    %c0_137 = arith.constant 0 : index
    %270 = vector.load %arg20[%c0_136, %c0_137] : memref<1x128xf32, #tpu.memory_space<vmem>>, vector<1x128xf32>
    %271 = arith.addf %269, %270 : vector<1x128xf32>
    %c0_138 = arith.constant 0 : index
    %c0_139 = arith.constant 0 : index
    %c0_140 = arith.constant 0 : index
    %272 = vector.load %arg21[%c0_138, %c0_139, %c0_140] : memref<1x1x128xf32, #tpu.memory_space<vmem>>, vector<1x1x128xf32>
    %273 = vector.shape_cast %272 : vector<1x1x128xf32> to vector<1x128xf32>
    %274 = vector.shape_cast %271 : vector<1x128xf32> to vector<1x1x128xf32>
    tpu.vector_store %arg21[%c0_138, %c0_139, %c0_140], %274 {strides = array<i32>} : memref<1x1x128xf32, #tpu.memory_space<vmem>>, vector<1x1x128xf32>,
    return
  }
  func.func @transform_0(%arg0: i32) -> (i32, i32, i32) {
    %c0_i32 = arith.constant 0 : i32
    %c0_i32_0 = arith.constant 0 : i32
    %c0_i32_1 = arith.constant 0 : i32
    return %arg0, %c0_i32, %c0_i32_0 : i32, i32, i32
  }
  func.func @transform_1(%arg0: i32) -> (i32, i32, i32) {
    %c0_i32 = arith.constant 0 : i32
    %c0_i32_0 = arith.constant 0 : i32
    %c0_i32_1 = arith.constant 0 : i32
    return %arg0, %c0_i32, %c0_i32_0 : i32, i32, i32
  }
  func.func @transform_2(%arg0: i32) -> (i32, i32) {
    %c0_i32 = arith.constant 0 : i32
    %c0_i32_0 = arith.constant 0 : i32
    %c0_i32_1 = arith.constant 0 : i32
    return %c0_i32, %c0_i32_0 : i32, i32
  }
  func.func @transform_3(%arg0: i32) -> (i32, i32) {
    %c0_i32 = arith.constant 0 : i32
    %c0_i32_0 = arith.constant 0 : i32
    %c0_i32_1 = arith.constant 0 : i32
    return %c0_i32, %c0_i32_0 : i32, i32
  }
  func.func @transform_4(%arg0: i32) -> (i32, i32, i32) {
    %c0_i32 = arith.constant 0 : i32
    %c0_i32_0 = arith.constant 0 : i32
    %c0_i32_1 = arith.constant 0 : i32
    %c0_i32_2 = arith.constant 0 : i32
    return %c0_i32, %c0_i32_0, %c0_i32_1 : i32, i32, i32
  }
  func.func @transform_5(%arg0: i32) -> (i32, i32, i32) {
    %c0_i32 = arith.constant 0 : i32
    %c0_i32_0 = arith.constant 0 : i32
    %c0_i32_1 = arith.constant 0 : i32
    %c0_i32_2 = arith.constant 0 : i32
    return %c0_i32, %c0_i32_0, %c0_i32_1 : i32, i32, i32
  }
  func.func @transform_6(%arg0: i32) -> (i32, i32, i32) {
    %c0_i32 = arith.constant 0 : i32
    %c0_i32_0 = arith.constant 0 : i32
    %c0_i32_1 = arith.constant 0 : i32
    %c0_i32_2 = arith.constant 0 : i32
    return %c0_i32, %c0_i32_0, %c0_i32_1 : i32, i32, i32
  }
  func.func @transform_7(%arg0: i32) -> (i32, i32, i32) {
    %c0_i32 = arith.constant 0 : i32
    %c0_i32_0 = arith.constant 0 : i32
    %c0_i32_1 = arith.constant 0 : i32
    %c0_i32_2 = arith.constant 0 : i32
    return %c0_i32, %c0_i32_0, %c0_i32_1 : i32, i32, i32
  }
  func.func @transform_8(%arg0: i32) -> (i32, i32, i32) {
    %c0_i32 = arith.constant 0 : i32
    %c0_i32_0 = arith.constant 0 : i32
    %c0_i32_1 = arith.constant 0 : i32
    %c0_i32_2 = arith.constant 0 : i32
    return %c0_i32, %c0_i32_0, %c0_i32_1 : i32, i32, i32
  }
  func.func @transform_9(%arg0: i32) -> (i32, i32, i32) {
    %c0_i32 = arith.constant 0 : i32
    %c0_i32_0 = arith.constant 0 : i32
    %c0_i32_1 = arith.constant 0 : i32
    %c0_i32_2 = arith.constant 0 : i32
    return %c0_i32, %c0_i32_0, %c0_i32_1 : i32, i32, i32
  }
  func.func @transform_10(%arg0: i32) -> (i32, i32, i32) {
    %c0_i32 = arith.constant 0 : i32
    %c0_i32_0 = arith.constant 0 : i32
    %c0_i32_1 = arith.constant 0 : i32
    %c0_i32_2 = arith.constant 0 : i32
    return %c0_i32, %c0_i32_0, %c0_i32_1 : i32, i32, i32
  }
  func.func @transform_11(%arg0: i32) -> (i32, i32, i32) {
    %c0_i32 = arith.constant 0 : i32
    %c0_i32_0 = arith.constant 0 : i32
    %c0_i32_1 = arith.constant 0 : i32
    %c0_i32_2 = arith.constant 0 : i32
    return %c0_i32, %c0_i32_0, %c0_i32_1 : i32, i32, i32
  }
  func.func @transform_12(%arg0: i32) -> (i32, i32, i32) {
    %c0_i32 = arith.constant 0 : i32
    %c0_i32_0 = arith.constant 0 : i32
    %c0_i32_1 = arith.constant 0 : i32
    %c0_i32_2 = arith.constant 0 : i32
    return %c0_i32, %c0_i32_0, %c0_i32_1 : i32, i32, i32
  }
  func.func @transform_13(%arg0: i32) -> (i32, i32, i32) {
    %c0_i32 = arith.constant 0 : i32
    %c0_i32_0 = arith.constant 0 : i32
    %c0_i32_1 = arith.constant 0 : i32
    %c0_i32_2 = arith.constant 0 : i32
    return %c0_i32, %c0_i32_0, %c0_i32_1 : i32, i32, i32
  }
  func.func @transform_14(%arg0: i32) -> (i32, i32, i32) {
    %c0_i32 = arith.constant 0 : i32
    %c0_i32_0 = arith.constant 0 : i32
    %c0_i32_1 = arith.constant 0 : i32
    %c0_i32_2 = arith.constant 0 : i32
    return %c0_i32, %c0_i32_0, %c0_i32_1 : i32, i32, i32
  }
  func.func @transform_15(%arg0: i32) -> (i32, i32, i32) {
    %c0_i32 = arith.constant 0 : i32
    %c0_i32_0 = arith.constant 0 : i32
    %c0_i32_1 = arith.constant 0 : i32
    %c0_i32_2 = arith.constant 0 : i32
    return %c0_i32, %c0_i32_0, %c0_i32_1 : i32, i32, i32
  }
  func.func @transform_16(%arg0: i32) -> (i32, i32) {
    %c0_i32 = arith.constant 0 : i32
    %c0_i32_0 = arith.constant 0 : i32
    %c0_i32_1 = arith.constant 0 : i32
    return %c0_i32, %c0_i32_0 : i32, i32
  }
  func.func @transform_17(%arg0: i32) -> (i32, i32) {
    %c0_i32 = arith.constant 0 : i32
    %c0_i32_0 = arith.constant 0 : i32
    %c0_i32_1 = arith.constant 0 : i32
    return %c0_i32, %c0_i32_0 : i32, i32
  }
  func.func @transform_18(%arg0: i32) -> (i32, i32) {
    %c0_i32 = arith.constant 0 : i32
    %c0_i32_0 = arith.constant 0 : i32
    %c0_i32_1 = arith.constant 0 : i32
    return %c0_i32, %c0_i32_0 : i32, i32
  }
  func.func @transform_19(%arg0: i32) -> (i32, i32) {
    %c0_i32 = arith.constant 0 : i32
    %c0_i32_0 = arith.constant 0 : i32
    %c0_i32_1 = arith.constant 0 : i32
    return %c0_i32, %c0_i32_0 : i32, i32
  }
  func.func @transform_20(%arg0: i32) -> (i32, i32, i32) {
    %c0_i32 = arith.constant 0 : i32
    %c0_i32_0 = arith.constant 0 : i32
    %c0_i32_1 = arith.constant 0 : i32
    return %arg0, %c0_i32, %c0_i32_0 : i32, i32, i32
  }
}

</mosaic_0001>

<bundles_post_ra>
// kernel: tpu_custom_call.1
= control target key start
LH: loop header
LB: loop body
LE: loop exit
PB: predicated region body
PF: predicated region fallthrough
CT: control target
= control target key end

     0   :  { %s5505_s0 = inlined_call_operand.hbm [shape: f32[2,8,32], index: 0, kind: input, shape index: {}]   ;;  %s5506_s1 = inlined_call_operand.hbm [shape: f32[2,1,8], index: 1, kind: input, shape index: {}]   ;;  %s5507_s2 = inlined_call_operand.hbm [shape: f32[1,32], index: 2, kind: input, shape index: {}]   ;;  %s5508_s3 = inlined_call_operand.hbm [shape: f32[1,32], index: 3, kind: input, shape index: {}]   ;;  %s5509_s4 = inlined_call_operand.vmem [shape: f32[2,32,96], index: 4, kind: input, shape index: {}]   ;;  %s5510_s5 = inlined_call_operand.hbm [shape: f32[2,1,96], index: 5, kind: input, shape index: {}]   ;;  %s5511_s6 = inlined_call_operand.vmem [shape: f32[2,32,32], index: 6, kind: input, shape index: {}]   ;;  %s5512_s7 = inlined_call_operand.hbm [shape: f32[2,1,32], index: 7, kind: input, shape index: {}]   ;;  %s5513_s8 = inlined_call_operand.hbm [shape: f32[2,1,32], index: 8, kind: input, shape index: {}]   ;;  %s5514_s9 = inlined_call_operand.hbm [shape: f32[2,1,32], index: 9, kind: input, shape index: {}]   ;;  %s5515_s10 = inlined_call_operand.vmem [shape: f32[2,32,64], index: 10, kind: input, shape index: {}]   ;;  %s5516_s11 = inlined_call_operand.hbm [shape: f32[2,1,64], index: 11, kind: input, shape index: {}]   ;;  %s5517_s12 = inlined_call_operand.vmem [shape: f32[2,64,32], index: 12, kind: input, shape index: {}]   ;;  %s5518_s13 = inlined_call_operand.hbm [shape: f32[2,1,32], index: 13, kind: input, shape index: {}]   ;;  %s5519_s14 = inlined_call_operand.hbm [shape: f32[2,1,32], index: 14, kind: input, shape index: {}]   ;;  %s5520_s15 = inlined_call_operand.hbm [shape: f32[2,1,32], index: 15, kind: input, shape index: {}]   ;;  %s5521_s16 = inlined_call_operand.hbm [shape: f32[32,32], index: 16, kind: input, shape index: {}]   ;;  %s5522_s17 = inlined_call_operand.hbm [shape: f32[1,32], index: 17, kind: input, shape index: {}]   ;;  %s5523_s18 = inlined_call_operand.vmem [shape: f32[32,128], index: 18, kind: input, shape index: {}]   ;;  %s5524_s19 = inlined_call_operand.hbm [shape: f32[1,128], index: 19, kind: input, shape index: {}]   ;;  %s5525_s20 = inlined_call_operand.hbm [shape: f32[2,1,128], index: 20, kind: output, shape index: {}]  }
   0x1   :  { %5541 = sst [smem:[#allocation37_spill]] %s5505_s0 }
   0x2   :  { %5542 = sst [smem:[#allocation38_spill]] %s5506_s1 }
   0x3   :  { %5543 = sst [smem:[#allocation39_spill]] %s5507_s2 }
   0x4   :  { %5544 = sst [smem:[#allocation40_spill]] %s5508_s3 }
   0x5   :  { %5545 = sst [smem:[#allocation41_spill]] %s5509_s4 }
   0x6   :  { %5546 = sst [smem:[#allocation42_spill]] %s5510_s5 }
   0x7   :  { %5547 = sst [smem:[#allocation43_spill]] %s5512_s7 }
   0x8   :  { %5548 = sst [smem:[#allocation44_spill]] %s5513_s8 }
   0x9   :  { %5549 = sst [smem:[#allocation45_spill]] %s5514_s9 }
   0xa   :  { %5550 = sst [smem:[#allocation46_spill]] %s5515_s10 }
   0xb   :  { %5551 = sst [smem:[#allocation47_spill]] %s5516_s11 }
   0xc   :  { %5552 = sst [smem:[#allocation48_spill]] %s5517_s12 }
   0xd   :  { %5553 = sst [smem:[#allocation49_spill]] %s5518_s13 }
   0xe   :  { %5554 = sst [smem:[#allocation50_spill]] %s5519_s14 }
   0xf   :  { %5555 = sst [smem:[#allocation51_spill]] %s5520_s15 }
  0x10   :  { %5556 = sst [smem:[#allocation52_spill]] %s5523_s18 }
  0x11   :  { %5557 = sst [smem:[#allocation53_spill]] %s5525_s20 }
  0x12   :  { %25 = vsyncpa [#allocation3], 0 }
  0x13   :  { %27 = vsyncpa [#allocation3 + $0x1], 0 }
  0x14   :  { %28 = vsyncpa [#allocation6], 0 }
  0x15   :  { %30 = vsyncpa [#allocation6 + $0x1], 0 }
  0x16   :  { %31 = vsyncpa [#allocation9], 0 }
  0x17   :  { %32 = vsyncpa [#allocation12], 0 }
  0x18   :  { %33 = vsyncpa [#allocation15], 0 }
  0x19   :  { %34 = vsyncpa [#allocation18], 0 }
  0x1a   :  { %35 = vsyncpa [#allocation21], 0 }
  0x1b   :  { %36 = vsyncpa [#allocation24], 0 }
  0x1c   :  { %37 = vsyncpa [#allocation4], 0 }
  0x1d   :  { %39 = vsyncpa [#allocation4 + $0x1], 0  ;;  %s4745_s1 = smov 0   ;;  %s4747_s22 = smov 0  }
  0x1e   :  { %s4749_s23 = smov 0   ;;  %s4751_s24 = smov 0  }
  0x1f LB: > { %s4610_s2 = smov [#allocation7]   ;;  %s4766_s3 = sadd.s32 4294967295, %s4608_s24   ;;  %s4608_s24 = sphi %s4751_s24, %s5609_s24   ;;  %s4604_s23 = sphi %s4749_s23, %s5608_s23   ;;  %s4600_s22 = sphi %s4747_s22, %s5607_s22   ;;  %s4596_s1 = sphi %s4745_s1, %s5606_s1  }
  0x20   : > { %s519_s25 = sshll.u32 %s4610_s2, 4  ;;  %p3533_p0 = scmp.ge.s32.totalorder %s4608_s24, 1  ;;  %s520_s25 = int_to_ptr.vmem [resolvable:$true] %s519_s25 }
  0x21   : > { %p5532_p1 = scmp.eq.s32.totalorder %s4766_s3, 0  ;;  %p506_p2 = scmp.lt.s32.totalorder %s4608_s24, 3 }
  0x22   : > { %s4611_s27 = smov [#allocation8]   ;;  %s4612_s29 = smov [#allocation11]  }
  0x23   : > { %p4771_p3 = pnand %p3533_p0, %p506_p2  ;;  %s530_s28 = sshll.u32 %s4611_s27, 4  ;;  %s531_s28 = int_to_ptr.vmem [resolvable:$true] %s530_s28 }
  0x24   : > { %s559_s30 = sshll.u32 %s4612_s29, 4  ;;  %s4129_s21 = scalar_lea.vmem %s520_s25, 16  ;;  %s4784_s30 = int_to_ptr.vmem [resolvable:$true] %s559_s30 }
  0x25   : > { %s5558_s26 = scalar_select %p4771_p3, 1, 0 }
  0x26   : > { %p3948_p5 = pneg %p4771_p3  ;;  %p4130_p8 = scmp.ne.s32.totalorder %s520_s25, %s4129_s21 }
  0x27   : > { %s4136_s2 = scalar_lea.vmem %s520_s25, 32  ;;  %p4137_p11 = scmp.lt.s32.totalorder %s520_s25, %s520_s25 }
  0x28   : > { %p4780_p6 = pnand %p3948_p5, %p5532_p1  ;;  %p4138_p12 = scmp.lt.s32.totalorder %s4136_s2, %s4129_s21 }
  0x2a   : > { %p4788_p7 = pneg %p4780_p6  ;;  %p4139_p13 = por %p4138_p12, %p4137_p11 }
  0x2c   : > { %p4132_p9 = pnand %p4130_p8, %p4788_p7 }
  0x2e   : > { %p4133_p10 = pneg %p4132_p9 }
  0x30   : > { %p4140_p0 = pnand %p4139_p13, %p4133_p10 }
  0x32   : > { %4143 = shalt.err (!%p4140_p0)
}
  0x33   : > { %s5561_s20 = sld [smem:[#allocation39_spill]]  ;;  %s4155_s18 = scalar_lea.vmem %s531_s28, 16 }
  0x34   : > { %p4156_p2 = scmp.ne.s32.totalorder %s531_s28, %s4155_s18  ;;  %s4162_s12 = scalar_lea.vmem %s531_s28, 32 }
  0x35   : > { %p4163_p8 = scmp.lt.s32.totalorder %s531_s28, %s531_s28  ;;  %p4164_p9 = scmp.lt.s32.totalorder %s4162_s12, %s4155_s18 }
  0x36   : > { %p4158_p5 = pnand %p4156_p2, %p4788_p7 }
  0x37   : > { %p4165_p1 = por %p4164_p9, %p4163_p8 }
  0x38   : > { %p4159_p4 = pneg %p4158_p5 }
  0x39   : > { %3951 = dma.hbm_to_vmem [thread:$0]  (!%p4780_p6), %s5561_s20, 16, %s520_s25, [#allocation6]  }
  0x3a   : > { %p4166_p3 = pnand %p4165_p1, %p4159_p4 }
  0x3c   : > { %4169 = shalt.err (!%p4166_p3)
}
  0x3d   : > { %s5562_s10 = sld [smem:[#allocation40_spill]]  ;;  %s4181_s20 = scalar_lea.vmem %s4784_s30, 32 }
  0x3e   : > { %p4182_p10 = scmp.ne.s32.totalorder %s4784_s30, %s4181_s20  ;;  %p4189_p13 = scmp.lt.s32.totalorder %s4784_s30, %s4784_s30 }
  0x3f   : > { %p4190_p0 = scmp.lt.s32.totalorder %s4181_s20, %s4181_s20 }
  0x40   : > { %p4184_p11 = pnand %p4182_p10, %p4788_p7 }
  0x41   : > { %p4191_p1 = por %p4190_p0, %p4189_p13 }
  0x42   : > { %p4185_p12 = pneg %p4184_p11 }
  0x43   : > { %3954 = dma.hbm_to_vmem [thread:$0]  (!%p4780_p6), %s5562_s10, 16, %s531_s28, [#allocation9]  }
  0x44   : > { %p4192_p3 = pnand %p4191_p1, %p4185_p12 }
  0x46   : > { %4195 = shalt.err (!%p4192_p3)
}
  0x47   : > { %s5535_s12 = smov 16   ;;  %s4614_s18 = smov 1  }
  0x48   : > { %s5563_s7 = sld [smem:[#allocation43_spill]]  ;;  %s4615_s28 = smov [#allocation14]  }
  0x49   : > { %s585_s27 = sshll.u32 %s4615_s28, 4  ;;  %s4616_s29 = smov [#allocation17]   ;;  %s586_s27 = int_to_ptr.vmem [resolvable:$true] %s585_s27 }
  0x4a   : > { %s617_s21 = sshll.u32 %s4616_s29, 4  ;;  %s4207_s2 = scalar_lea.vmem %s586_s27, 32  ;;  %s618_s21 = int_to_ptr.vmem [resolvable:$true] %s617_s21 }
  0x4b   : > { %p4208_p4 = scmp.ne.s32.totalorder %s586_s27, %s4207_s2  ;;  %p4215_p8 = scmp.lt.s32.totalorder %s586_s27, %s586_s27 }
  0x4c   : > { %p4216_p9 = scmp.lt.s32.totalorder %s4207_s2, %s4207_s2 }
  0x4d   : > { %p4210_p2 = pnand %p4208_p4, %p4788_p7 }
  0x4e   : > { %3960 = dma.hbm_to_vmem [thread:$0]  (!%p4780_p6), %s5563_s7, 32, %s4784_s30, [#allocation12], %s5535_s12, %s5535_s12, %s4614_s18  }
  0x4f   : > { %p4211_p5 = pneg %p4210_p2  ;;  %p4217_p10 = por %p4216_p9, %p4215_p8 }
  0x51   : > { %p4218_p11 = pnand %p4217_p10, %p4211_p5 }
  0x53   : > { %4221 = shalt.err (!%p4218_p11)
}
  0x54   : > { %s5564_s9 = sld [smem:[#allocation45_spill]]  ;;  %s4233_s10 = scalar_lea.vmem %s618_s21, 32 }
  0x55   : > { %p4234_p12 = scmp.ne.s32.totalorder %s618_s21, %s4233_s10  ;;  %p4241_p1 = scmp.lt.s32.totalorder %s618_s21, %s618_s21 }
  0x56   : > { %p4242_p3 = scmp.lt.s32.totalorder %s4233_s10, %s4233_s10 }
  0x57   : > { %p4236_p13 = pnand %p4234_p12, %p4788_p7 }
  0x58   : > { %p4243_p4 = por %p4242_p3, %p4241_p1 }
  0x59   : > { %p4237_p0 = pneg %p4236_p13 }
  0x5a   : > { %3966 = dma.hbm_to_vmem [thread:$0]  (!%p4780_p6), %s5564_s9, 32, %s586_s27, [#allocation15], %s5535_s12, %s5535_s12, %s4614_s18  }
  0x5b   : > { %p4244_p2 = pnand %p4243_p4, %p4237_p0 }
  0x5d   : > { %4247 = shalt.err (!%p4244_p2)
}
  0x5e   : > { %s5565_s13 = sld [smem:[#allocation49_spill]]  ;;  %s4617_s27 = smov [#allocation20]  }
  0x5f   : > { %s643_s29 = sshll.u32 %s4617_s27, 4  ;;  %s4618_s2 = smov [#allocation23]   ;;  %s644_s29 = int_to_ptr.vmem [resolvable:$true] %s643_s29 }
  0x60   : > { %s670_s30 = sshll.u32 %s4618_s2, 4  ;;  %s4259_s20 = scalar_lea.vmem %s644_s29, 32  ;;  %s671_s30 = int_to_ptr.vmem [resolvable:$true] %s670_s30 }
  0x61   : > { %p4260_p5 = scmp.ne.s32.totalorder %s644_s29, %s4259_s20  ;;  %p4267_p10 = scmp.lt.s32.totalorder %s644_s29, %s644_s29 }
  0x62   : > { %p4268_p11 = scmp.lt.s32.totalorder %s4259_s20, %s4259_s20 }
  0x63   : > { %p4262_p8 = pnand %p4260_p5, %p4788_p7 }
  0x64   : > { %3972 = dma.hbm_to_vmem [thread:$0]  (!%p4780_p6), %s5565_s13, 32, %s618_s21, [#allocation18], %s5535_s12, %s5535_s12, %s4614_s18  }
  0x65   : > { %p4263_p9 = pneg %p4262_p8  ;;  %p4269_p12 = por %p4268_p11, %p4267_p10 }
  0x67   : > { %p4270_p13 = pnand %p4269_p12, %p4263_p9 }
  0x69   : > { %4273 = shalt.err (!%p4270_p13)
}
  0x6a   : > { %s5566_s15 = sld [smem:[#allocation51_spill]]  ;;  %s4285_s25 = scalar_lea.vmem %s671_s30, 16 }
  0x6b   : > { %p4286_p0 = scmp.ne.s32.totalorder %s671_s30, %s4285_s25  ;;  %s4292_s28 = scalar_lea.vmem %s671_s30, 32 }
  0x6c   : > { %p4293_p4 = scmp.lt.s32.totalorder %s671_s30, %s671_s30  ;;  %p4294_p2 = scmp.lt.s32.totalorder %s4292_s28, %s4285_s25 }
  0x6d   : > { %p4288_p1 = pnand %p4286_p0, %p4788_p7 }
  0x6e   : > { %p4295_p5 = por %p4294_p2, %p4293_p4 }
  0x6f   : > { %p4289_p3 = pneg %p4288_p1 }
  0x70   : > { %3978 = dma.hbm_to_vmem [thread:$0]  (!%p4780_p6), %s5566_s15, 32, %s644_s29, [#allocation21], %s5535_s12, %s5535_s12, %s4614_s18  }
  0x71   : > { %p4296_p8 = pnand %p4295_p5, %p4289_p3 }
  0x73   : > { %4299 = shalt.err (!%p4296_p8)
}
  0x74   : > { %3984 = dma.hbm_to_vmem [thread:$0]  (!%p4780_p6), %s5522_s17, 16, %s671_s30, [#allocation24]  }
  0x75   : > { %s4619_s29 = smov [#allocation10]   ;;  %s4620_s21 = smov [#allocation13]  }
  0x76   : > { %s543_s20 = sshll.u32 %s4619_s29, 4  ;;  %s572_s10 = sshll.u32 %s4620_s21, 4  ;;  %s544_s20 = int_to_ptr.vmem [resolvable:$true] %s543_s20  ;;  %s573_s10 = int_to_ptr.vmem [resolvable:$true] %s572_s10 }
  0x77   : > { %s4311_s12 = scalar_lea.vmem %s544_s20, 32  ;;  %p4319_p12 = scmp.lt.s32.totalorder %s544_s20, %s544_s20 }
  0x78   : > { %p4312_p9 = scmp.ne.s32.totalorder %s544_s20, %s4311_s12  ;;  %p4320_p13 = scmp.lt.s32.totalorder %s4311_s12, %s4311_s12 }
  0x7a   : > { %p4314_p10 = pnand %p4312_p9, %p4788_p7  ;;  %p4321_p0 = por %p4320_p13, %p4319_p12 }
  0x7c   : > { %p4315_p11 = pneg %p4314_p10 }
  0x7e   : > { %p4322_p1 = pnand %p4321_p0, %p4315_p11 }
  0x80   : > { %4325 = shalt.err (!%p4322_p1)
}
  0x81   : > { %s5567_s25 = smov 16   ;;  %s5568_s5 = sld [smem:[#allocation42_spill]] }
  0x82   : > { %s4337_s27 = scalar_lea.vmem %s573_s10, 32  ;;  %p4345_p5 = scmp.lt.s32.totalorder %s573_s10, %s573_s10 }
  0x83   : > { %p4338_p3 = scmp.ne.s32.totalorder %s573_s10, %s4337_s27  ;;  %p4346_p8 = scmp.lt.s32.totalorder %s4337_s27, %s4337_s27 }
  0x85   : > { %p4340_p4 = pnand %p4338_p3, %p4788_p7  ;;  %p4347_p9 = por %p4346_p8, %p4345_p5 }
  0x87   : > { %3957 = dma.hbm_to_vmem [thread:$0]  (!%p4780_p6), %s5568_s5, 32, %s544_s20, [#allocation9], %s5567_s25, %s5567_s25, %s4614_s18  }
  0x88   : > { %p4341_p2 = pneg %p4340_p4 }
  0x8a   : > { %p4348_p10 = pnand %p4347_p9, %p4341_p2 }
  0x8c   : > { %4351 = shalt.err (!%p4348_p10)
}
  0x8d   : > { %s5569_s8 = sld [smem:[#allocation44_spill]]  ;;  %s4621_s29 = smov [#allocation16]  }
  0x8e   : > { %s601_s20 = sshll.u32 %s4621_s29, 4  ;;  %s4622_s21 = smov [#allocation19]   ;;  %s602_s20 = int_to_ptr.vmem [resolvable:$true] %s601_s20 }
  0x8f   : > { %s630_s30 = sshll.u32 %s4622_s21, 4  ;;  %s4363_s28 = scalar_lea.vmem %s602_s20, 32  ;;  %s631_s30 = int_to_ptr.vmem [resolvable:$true] %s630_s30 }
  0x90   : > { %p4364_p11 = scmp.ne.s32.totalorder %s602_s20, %s4363_s28  ;;  %p4371_p0 = scmp.lt.s32.totalorder %s602_s20, %s602_s20 }
  0x91   : > { %p4372_p1 = scmp.lt.s32.totalorder %s4363_s28, %s4363_s28 }
  0x92   : > { %p4366_p12 = pnand %p4364_p11, %p4788_p7 }
  0x93   : > { %3963 = dma.hbm_to_vmem [thread:$0]  (!%p4780_p6), %s5569_s8, 32, %s573_s10, [#allocation12], %s5567_s25, %s5567_s25, %s4614_s18  }
  0x94   : > { %p4367_p13 = pneg %p4366_p12  ;;  %p4373_p3 = por %p4372_p1, %p4371_p0 }
  0x96   : > { %p4374_p4 = pnand %p4373_p3, %p4367_p13 }
  0x98   : > { %4377 = shalt.err (!%p4374_p4)
}
  0x99   : > { %s5570_s11 = sld [smem:[#allocation47_spill]]  ;;  %s4389_s12 = scalar_lea.vmem %s631_s30, 32 }
  0x9a   : > { %p4390_p2 = scmp.ne.s32.totalorder %s631_s30, %s4389_s12  ;;  %p4397_p9 = scmp.lt.s32.totalorder %s631_s30, %s631_s30 }
  0x9b   : > { %p4398_p10 = scmp.lt.s32.totalorder %s4389_s12, %s4389_s12 }
  0x9c   : > { %p4392_p5 = pnand %p4390_p2, %p4788_p7 }
  0x9d   : > { %p4399_p11 = por %p4398_p10, %p4397_p9 }
  0x9e   : > { %p4393_p8 = pneg %p4392_p5 }
  0x9f   : > { %3969 = dma.hbm_to_vmem [thread:$0]  (!%p4780_p6), %s5570_s11, 32, %s602_s20, [#allocation15], %s5567_s25, %s5567_s25, %s4614_s18  }
  0xa0   : > { %p4400_p12 = pnand %p4399_p11, %p4393_p8 }
  0xa2   : > { %4403 = shalt.err (!%p4400_p12)
}
  0xa3   : > { %s5571_s14 = sld [smem:[#allocation50_spill]]  ;;  %s4623_s20 = smov [#allocation22]  }
  0xa4   : > { %s656_s21 = sshll.u32 %s4623_s20, 4  ;;  %s657_s21 = int_to_ptr.vmem [resolvable:$true] %s656_s21 }
  0xa5   : > { %s4415_s28 = scalar_lea.vmem %s657_s21, 512  ;;  %p4423_p3 = scmp.lt.s32.totalorder %s657_s21, %s657_s21 }
  0xa6   : > { %p4416_p13 = scmp.ne.s32.totalorder %s657_s21, %s4415_s28  ;;  %p4424_p4 = scmp.lt.s32.totalorder %s4415_s28, %s4415_s28 }
  0xa8   : > { %p4418_p0 = pnand %p4416_p13, %p4788_p7  ;;  %p4425_p2 = por %p4424_p4, %p4423_p3 }
  0xa9   : > { %3975 = dma.hbm_to_vmem [thread:$0]  (!%p4780_p6), %s5571_s14, 32, %s631_s30, [#allocation18], %s5567_s25, %s5567_s25, %s4614_s18  }
  0xaa   : > { %p4419_p1 = pneg %p4418_p0 }
  0xac   : > { %p4426_p5 = pnand %p4425_p2, %p4419_p1 }
  0xae   : > { %4429 = shalt.err (!%p4426_p5)
}
  0xaf   : > { %s4624_s10 = smov 128   ;;  %s4625_s27 = smov 8  }
  0xb0   : > { %3981 = dma.hbm_to_vmem [thread:$0]  (!%p4780_p6), %s5521_s16, 512, %s657_s21, [#allocation21], %s4624_s10, %s4624_s10, %s4625_s27  }
  0xb1   : > { %s4626_s25 = smov [#allocation25]  }
  0xb2   : > { %s684_s30 = sshll.u32 %s4626_s25, 4  ;;  %s685_s30 = int_to_ptr.vmem [resolvable:$true] %s684_s30 }
  0xb3   : > { %s4441_s2 = scalar_lea.vmem %s685_s30, 16  ;;  %s4448_s29 = scalar_lea.vmem %s685_s30, 32 }
  0xb4   : > { %p4442_p8 = scmp.ne.s32.totalorder %s685_s30, %s4441_s2  ;;  %p4449_p11 = scmp.lt.s32.totalorder %s685_s30, %s685_s30 }
  0xb5   : > { %p4450_p12 = scmp.lt.s32.totalorder %s4448_s29, %s4441_s2 }
  0xb6   : > { %p4444_p9 = pnand %p4442_p8, %p4788_p7 }
  0xb7   : > { %p4451_p13 = por %p4450_p12, %p4449_p11 }
  0xb8   : > { %p4445_p10 = pneg %p4444_p9 }
  0xba   : > { %p4452_p0 = pnand %p4451_p13, %p4445_p10 }
  0xbc   : > { %4455 = shalt.err (!%p4452_p0)
}
  0xbd   : > { %3987 = dma.hbm_to_vmem [thread:$0]  (!%p4780_p6), %s5524_s19, 16, %s685_s30, [#allocation24]  }
  0xbe   : > { %s3532_s0 = sadd.s32 4294967294, %s4608_s24   ;;  %s4914_s4 = sadd.s32 1, %s4608_s24  }
  0xbf   : > { %s52_s21 = sadd.s32 1, %s4604_s23  ;;  %s49_s10 = ssub.s32 %s4608_s24, %s4914_s4 }
  0xc0   : > { %p59_p7 = scmp.ne.s32.totalorder %s4604_s23, %s4600_s22  ;;  %p50_p1 = scmp.eq.s32.totalorder %s49_s10, 0 }
  0xc1   : > { %p60_p3 = scmp.eq.s32.totalorder %s4608_s24, 0  ;;  %p65_p4 = scmp.ne.s32.totalorder %s4600_s22, %s4596_s1 }
  0xc2   : > { %p493_p2 = scmp.eq.s32.totalorder %s4766_s3, 1  ;;  %p5572_p8 = scmp.eq.s32.totalorder %s4766_s3, 0 }
  0xc3   : > { %s4926_s27 = scalar_select %p50_p1, %s4604_s23, %s52_s21  }
  0xc4   : > { %p61_p5 = por %p60_p3, %p59_p7  ;;  %p4930_p9 = por %p5572_p8, %p65_p4 }
  0xc5   : > { %p4934_p6 = por %p493_p2, %p59_p7  ;;  %p499_p10 = scmp.eq.s32.totalorder %s3532_s0, 1 }
  0xc6   : > { %s5573_s12 = scalar_select %p4930_p9, 1, 0 }
  0xc7   : > { %s5574_s18 = scalar_select %p4934_p6, 1, 0 }
  0xc8   : > { %p4012_p11 = scmp.lt.s32.totalorder %s4608_s24, 2  ;;  %s4940_s25 = sand.u32 1, %s4604_s23  }
  0xc9   : > { %p4942_p12 = por %p499_p10, %p65_p4  ;;  %s3548_s2 = sshll.u32 %s4940_s25, 3 }
  0xca   : > { %s3549_s29 = sshll.u32 %s4608_s24, 7  ;;  %s5576_s21 = sld [smem:[#allocation37_spill]] }
  0xcb   : > { %s5575_s30 = scalar_select %p4942_p12, 1, 0 }
  0xcc   : > { %s699_s0 = scalar_lea.vmem [#allocation2], %s3548_s2  ;;  %p4953_p13 = pnand %p4012_p11, %p61_p5 }
  0xcd   : > { %s706_s5 = sshll.u32 %s699_s0, 4  ;;  %s696_s9 = scalar_lea.sflag [#allocation3], %s4940_s25  ;;  %s707_s5 = int_to_ptr.vmem [resolvable:$true] %s706_s5 }
  0xce   : > { %p4458_p7 = pneg %p4953_p13 }
  0xd0   : > { %s4951_s10 = scalar_lea.hbm %s5576_s21, %s3549_s29  ;;  %s4461_s20 = scalar_lea.hbm %s5576_s21, 256 }
  0xd1   : > { %s4456_s11 = scalar_lea.hbm %s4951_s10, 128  ;;  %p4462_p4 = scmp.lt.s32.totalorder %s4951_s10, %s5576_s21 }
  0xd2   : > { %p4457_p0 = scmp.ne.s32.totalorder %s4951_s10, %s4456_s11  ;;  %p4463_p2 = scmp.lt.s32.totalorder %s4461_s20, %s4456_s11 }
  0xd4   : > { %p4459_p1 = pnand %p4458_p7, %p4457_p0  ;;  %p4464_p5 = por %p4463_p2, %p4462_p4 }
  0xd6   : > { %p4460_p3 = pneg %p4459_p1 }
  0xd8   : > { %p4465_p8 = pnand %p4464_p5, %p4460_p3 }
  0xda   : > { %4468 = shalt.err (!%p4465_p8)
}
  0xdb   : > { %s4469_s8 = scalar_lea.vmem %s707_s5, 128  ;;  %s4627_s13 = smov [#allocation2]  }
  0xdc   : > { %p4470_p10 = scmp.ne.s32.totalorder %s707_s5, %s4469_s8  ;;  %s4474_s14 = sshll.u32 %s4627_s13, 4  ;;  %s4475_s14 = int_to_ptr.vmem [resolvable:$false] %s4474_s14 }
  0xdd   : > { %s4476_s29 = scalar_lea.vmem %s4475_s14, 256  ;;  %p4477_p1 = scmp.lt.s32.totalorder %s707_s5, %s4475_s14 }
  0xde   : > { %p4472_p11 = pnand %p4470_p10, %p4458_p7  ;;  %p4478_p12 = scmp.lt.s32.totalorder %s4476_s29, %s4469_s8 }
  0xe0   : > { %p4473_p0 = pneg %p4472_p11  ;;  %p4479_p6 = por %p4478_p12, %p4477_p1 }
  0xe2   : > { %p4480_p9 = pnand %p4479_p6, %p4473_p0 }
  0xe4   : > { %4483 = shalt.err (!%p4480_p9)
}
  0xe5   : > { %3991 = dma.hbm_to_vmem [thread:$0]  (!%p4953_p13), %s4951_s10, 128, %s707_s5, %s696_s9  }
  0xe6   : > { %s3550_s11 = sshll.u32 %s4608_s24, 4  ;;  %s5578_s28 = sld [smem:[#allocation38_spill]] }
  0xe7   : > { %s716_s8 = scalar_lea.vmem [#allocation5], %s4940_s25  ;;  %s5579_s0 = sand.u32 1, %s4608_s24  }
  0xe8   : > { %s723_s14 = sshll.u32 %s716_s8, 4  ;;  %s714_s29 = scalar_lea.sflag [#allocation6], %s5579_s0  ;;  %s724_s14 = int_to_ptr.vmem [resolvable:$true] %s723_s14 }
  0xec   : > { %s4983_s13 = scalar_lea.hbm %s5578_s28, %s3550_s11  ;;  %s4489_s10 = scalar_lea.hbm %s5578_s28, 32 }
  0xed   : > { %s4484_s15 = scalar_lea.hbm %s4983_s13, 16  ;;  %p4490_p3 = scmp.lt.s32.totalorder %s4983_s13, %s5578_s28 }
  0xee   : > { %p4485_p9 = scmp.ne.s32.totalorder %s4983_s13, %s4484_s15  ;;  %p4491_p4 = scmp.lt.s32.totalorder %s4489_s10, %s4484_s15 }
  0xf0   : > { %p4487_p6 = pnand %p4485_p9, %p4458_p7  ;;  %p4492_p2 = por %p4491_p4, %p4490_p3 }
  0xf2   : > { %p4488_p12 = pneg %p4487_p6 }
  0xf4   : > { %p4493_p5 = pnand %p4492_p2, %p4488_p12 }
  0xf6   : > { %4496 = shalt.err (!%p4493_p5)
}
  0xf7   : > { %s4497_s25 = scalar_lea.vmem %s724_s14, 16  ;;  %s4628_s20 = smov [#allocation5]  }
  0xf8   : > { %p4498_p8 = scmp.ne.s32.totalorder %s724_s14, %s4497_s25  ;;  %s4502_s8 = sshll.u32 %s4628_s20, 4  ;;  %s4503_s8 = int_to_ptr.vmem [resolvable:$false] %s4502_s8 }
  0xf9   : > { %s4504_s0 = scalar_lea.vmem %s4503_s8, 32  ;;  %p4505_p0 = scmp.lt.s32.totalorder %s724_s14, %s4503_s8 }
  0xfa   : > { %p4500_p10 = pnand %p4498_p8, %p4458_p7  ;;  %p4506_p1 = scmp.lt.s32.totalorder %s4504_s0, %s4497_s25 }
  0xfc   : > { %p4501_p11 = pneg %p4500_p10  ;;  %p4507_p9 = por %p4506_p1, %p4505_p0 }
  0xfe   : > { %p4508_p6 = pnand %p4507_p9, %p4501_p11 }
 0x100   : > { %4511 = shalt.err (!%p4508_p6)
}
 0x101   : > { %3994 = dma.hbm_to_vmem [thread:$0]  (!%p4953_p13), %s4983_s13, 16, %s724_s14, %s714_s29  }
 0x102   : > { %p5580_p12 = scmp.ne.s32.totalorder %s5558_s26, 0 }
 0x103   : > { %s5009_s15 = sand.u32 (!%p5580_p12), 1, %s4600_s22   ;;  %p5581_p7 = scmp.ne.s32.totalorder (!%p5580_p12), %s5573_s12, 0 }
 0x104   : > { %732 = sbr.rel (%p5580_p12) target bundleno = 5847 (0x16d7), region = 100  ;;  %s3552_s5 = sshll.u32 (!%p5580_p12), %s5009_s15, 3 }
 0x105   : > { %s735_s9 = scalar_lea.sflag (!%p5580_p12), [#allocation3], %s5009_s15  ;;  %s738_s10 = scalar_lea.vmem (!%p5580_p12), [#allocation2], %s3552_s5 }
 0x109   : > { %4555 = dma.done.wait (%p5581_p7), %s735_s9, 128  }
 0x10a   : > { %4557 = vsyncadd (%p5581_p7), %s735_s9, 4294967168  ;;  %s743_s7 = sand.u32 1, %s4766_s3   ;;  %s746_s13 = scalar_lea.vmem [#allocation5], %s5009_s15 }
 0x10b   : > { %s744_s26 = scalar_lea.sflag [#allocation6], %s743_s7 }
 0x10c   : > { %4559 = dma.done.wait (%p5581_p7), %s744_s26, 16  }
 0x10d   : > { %4561 = vsyncadd (%p5581_p7), %s744_s26, 4294967280  ;;  %p5582_p13 = scmp.eq.s32.totalorder %s4766_s3, 0 }
 0x10f   : > { %4563 = dma.done.wait (%p5582_p13), [#allocation6], 16   ;;  %p5583_p3 = pmov %p5582_p13 }
 0x111   : > { %4565 = vsyncadd (%p5583_p3), [#allocation6], 4294967280  ;;  %p5584_p4 = pmov %p5583_p3 }
 0x112   : > { %p5585_p2 = pmov %p5583_p3 }
 0x113   : > { %4567 = dma.done.wait (%p5584_p4), [#allocation9], 48  }
 0x114   : > { %4569 = vsyncadd (%p5585_p2), [#allocation9], 4294967248  ;;  %p5586_p5 = pmov %p5585_p2 }
 0x115   : > { %p5587_p8 = pmov %p5585_p2 }
 0x116   : > { %4571 = dma.done.wait (%p5586_p5), [#allocation12], 64  }
 0x117   : > { %4573 = vsyncadd (%p5587_p8), [#allocation12], 4294967232  ;;  %p5588_p10 = pmov %p5585_p2 }
 0x118   : > { %p5589_p11 = pmov %p5585_p2 }
 0x119   : > { %4575 = dma.done.wait (%p5588_p10), [#allocation15], 64  }
 0x11a   : > { %4577 = vsyncadd (%p5589_p11), [#allocation15], 4294967232  ;;  %p5590_p0 = pmov %p5585_p2 }
 0x11c   : > { %4579 = dma.done.wait (%p5590_p0), [#allocation18], 64   ;;  %p5591_p1 = pmov %p5590_p0 }
 0x11d   : > { %p5592_p9 = pmov %p5590_p0 }
 0x11e   : > { %4581 = vsyncadd (%p5591_p1), [#allocation18], 4294967232 }
 0x11f   : > { %4583 = dma.done.wait (%p5592_p9), [#allocation21], 544   ;;  %p5593_p6 = pmov %p5590_p0 }
 0x120   : > { %p5594_p12 = pmov %p5590_p0 }
 0x121   : > { %4585 = vsyncadd (%p5593_p6), [#allocation21], 4294966752 }
 0x122   : > { %4587 = dma.done.wait (%p5594_p12), [#allocation24], 32   ;;  %p5595_p7 = pmov %p5590_p0 }
 0x123   : > { %vm862_vm0 = vcmask 261120   ;;  %v858_v0 = vld [vmem:[%s738_s10] sm:$0xff]  ;;  %s5596_s29 = sld [smem:[#allocation41_spill]]  ;;  %v4629_v8 = vmov 0.0   ;;  %vm4630_vm1 = vmmov 0   ;;  %s4631_s5 = smov 80   ;;  %v996_v27 = vlaneseq }
 0x124   : > { %4589 = vsyncadd (%p5595_p7), [#allocation24], 4294967264  ;;  %v863_v1 = vsel %vm862_vm0, %v858_v0, 0.0  ;;  %3724 = vmatprep.subr.mxu0 %v4629_v8  ;;  %3732 = vmatprep.mubr.msk.f32.mxu0 %vm4630_vm1, %v4629_v8  ;;  %v3566_v16 = vld [vmem:[#allocation7] ss:$0 sm:$0xff]  ;;  %s4632_s9 = smov 112  }
 0x125   : > { %864 = vadd.xlane.f32.xlu0 %v863_v1  ;;  %3735 = vmatprep.subr.mxu1 %v4629_v8  ;;  %v3567_v18 = vld [vmem:[#allocation8] ss:$0 sm:$0xff]  ;;  %v3568_v21 = vld [vmem:[#allocation10] ss:$0 sm:$0xff]  ;;  %s4633_s10 = smov 96   ;;  %v997_v31 = vshrl.u32 %v996_v27, 7 }
 0x126   : > { %3737 = vmatprep.mubr.msk.f32.mxu1 %vm4630_vm1, %v4629_v8  ;;  %v4634_v25 = vmov 1983009808   ;;  %v4635_v28 = vmov 1934713408   ;;  %vm1249_vm2 = vcmask 130048   ;;  %vm1402_vm3 = vcmask 64512  }
 0x127   : > { %v994_v26 = vunpack.c.l.s4 %v4634_v25  ;;  %v1056_v29 = vunpack.c.l.s4 %v4635_v28  ;;  %s5540_s7 = smov 48   ;;  %s4637_s26 = smov 64   ;;  %vm1908_vm4 = vcmask 523264  }
 0x128   : > { %s5539_s0 = smov 16   ;;  %s5597_s14 = sld [smem:[#allocation46_spill]] }
 0x129   : > { %v894_v7 = vld [vmem:[%s5596_s29 + $0x18] sm:$0xff]  ;;  %v893_v9 = vld [vmem:[%s5596_s29 + $0x10] sm:$0xff]  ;;  %v892_v10 = vld [vmem:[%s5596_s29 + $0x8] sm:$0xff]  ;;  %v995_v30 = vunpack.c.0.s8 %v994_v26  ;;  %v1057_v34 = vunpack.c.0.s8 %v1056_v29  ;;  %s5598_s12 = sld [smem:[#allocation48_spill]]  ;;  %s5600_s20 = smov 16  }
 0x12a   : > { %3725 = vmatpush3.msra.mxu0 %v894_v7  ;;  %v891_v11 = vld [vmem:[%s5596_s29] sm:$0xff]  ;;  %s3647_s2 = sshll.u32 %s4766_s3, 4  ;;  %s857_s25 = scalar_lea.vmem [#allocation26], %s5009_s15 }
 0x12b   : > { %3726 = vmatprep.subr.mxu0 %v4629_v8  ;;  %v5089_v35 = vsub.s32 %v995_v30, %v997_v31  ;;  %v5093_v41 = vsub.s32 %v1057_v34, %v997_v31  ;;  %p5603_p3 = scmp.ne.s32.totalorder %s5574_s18, 0 }
 0x12c   : > { %3727 = vmatpush3.msra.mxu0 %v893_v9 }
 0x12d   : > { %3728 = vmatprep.subr.mxu0 %v4629_v8 }
 0x12e   : > { %3729 = vmatpush3.msra.mxu0 %v892_v10 }
 0x12f   : > { %3730 = vmatprep.subr.mxu0 %v4629_v8 }
 0x130   : > { %3731 = vmatpush3.msra.mxu0 %v891_v11  ;;  %v5123_v11 = vld [vmem:[%s746_s13] ss:$0 sm:$0xff]  ;;  %s4639_s13 = smov [#allocation26]  }
 0x131   : > { %3745 = vmatprep.subr.mxu0 %v4629_v8  ;;  %s4516_s3 = sshll.u32 %s4639_s13, 4  ;;  %s4517_s3 = int_to_ptr.vmem [resolvable:$false] %s4516_s3 }
 0x132   : > { %s4518_s11 = scalar_lea.vmem %s4517_s3, 32 }
 0x1ae   : > { %v865_v2 = vpop.xlane.xlu0 %864 }
 0x1af   : > { %v867_v3 = vmul.f32 0.03125, %v865_v2 }
 0x1b1   : > { %v868_v4 = vsub.f32 %v858_v0, %v867_v3 }
 0x1b3   : > { %v869_v5 = vmul.f32 %v868_v4, %v868_v4 }
 0x1b5   : > { %v870_v6 = vsel %vm862_vm0, %v869_v5, 0.0 }
 0x1b6   : > { %871 = vadd.xlane.f32.xlu0 %v870_v6 }
 0x23f   : > { %v872_v12 = vpop.xlane.xlu0 %871 }
 0x240   : > { %v873_v13 = vmul.f32 0.03125, %v872_v12 }
 0x242   : > { %v874_v14 = vadd.f32 1e-12, %v873_v13 }
 0x244   : > { %4086 = vrsqrt.f32 %v874_v14 }
 0x251   : > { %v4087_v15 = vpop.eup %4086 }
 0x252   : > { %v876_v17 = vmul.f32 %v4087_v15, %v868_v4 }
 0x254   : > { %v883_v19 = vmul.f32 %v3566_v16, %v876_v17 }
 0x256   : > { %v5075_v20 = vadd.f32 %v3567_v18, %v883_v19 }
 0x258   : > { %3733 = vmatmul.mubr.msk.f32.vlgmr.msra.gmra.mxu0 %vm862_vm0, %v5075_v20 }
 0x259   : > { %3747 = vmatprep.mubr.msk.f32.mxu0 %vm4630_vm1, %v4629_v8 }
 0x318   : > { %v971_v22 = vpop.f32.mrf.mxu0 }
 0x319   : > { %v5081_v23 = vadd.f32 %v3568_v21, %v971_v22 }
 0x31a   : > { %v3734_v24 = vpop.f32.mrf.mxu0 }
 0x31b   : > { %982 = vrot.lane.b32.xlu0 %v5081_v23, %s4631_s5  ;;  %976 = vrot.lane.b32.xlu1 %v5081_v23, %s4632_s9 }
 0x31f   : > { %979 = vrot.lane.b32.xlu1 %v5081_v23, %s4633_s10 }
 0x38d   : > { %v983_v32 = vpop.permute.xlu0 %982  ;;  %v977_v33 = vpop.permute.xlu1 %976 }
 0x38e   : > { %v1007_v36 = vcombine.low %v977_v33, %v983_v32  ;;  %v1008_v37 = vcombine.high %v977_v33, %v983_v32 }
 0x390   : > { %v1015_v42 = vrot.slane %v1007_v36, %v5089_v35  ;;  %v1022_v43 = vrot.slane %v1008_v37, %v5089_v35 }
 0x391   : > { %v980_v38 = vpop.permute.xlu1 %979 }
 0x392   : > { %v991_v39 = vcombine.low %v5081_v23, %v980_v38  ;;  %v992_v40 = vcombine.high %v5081_v23, %v980_v38 }
 0x394   : > { %v999_v44 = vrot.slane %v991_v39, %v5089_v35  ;;  %v1006_v45 = vrot.slane %v992_v40, %v5089_v35 }
 0x396   : > { %v1053_v46 = vcombine.low %v999_v44, %v1015_v42  ;;  %v1054_v47 = vcombine.high %v999_v44, %v1015_v42  ;;  %v1069_v48 = vcombine.low %v1006_v45, %v1022_v43  ;;  %v1070_v49 = vcombine.high %v1006_v45, %v1022_v43 }
 0x398   : > { %v1061_v50 = vrot.slane %v1053_v46, %v5093_v41  ;;  %v1068_v51 = vrot.slane %v1054_v47, %v5093_v41  ;;  %v1077_v52 = vrot.slane %v1069_v48, %v5093_v41  ;;  %v1084_v53 = vrot.slane %v1070_v49, %v5093_v41 }
 0x39a   : > { %v3570_v54 = vcombine.low %v1061_v50, %v1068_v51  ;;  %v3572_v55 = vcombine.high %v1061_v50, %v1068_v51  ;;  %v3574_v56 = vcombine.low %v1077_v52, %v1084_v53  ;;  %v3576_v57 = vcombine.high %v1077_v52, %v1084_v53 }
 0x39c   : > { %v1133_v58 = vrot.slane %v3570_v54, %v5089_v35  ;;  %v1149_v59 = vrot.slane %v3572_v55, %v5089_v35  ;;  %v1165_v60 = vrot.slane %v3574_v56, %v5089_v35  ;;  %v1181_v61 = vrot.slane %v3576_v57, %v5089_v35 }
 0x39e   : > { %v1190_v62 = vcombine.high %v1133_v58, %v1149_v59  ;;  %v1214_v63 = vcombine.high %v1165_v60, %v1181_v61  ;;  %v1189_v0 = vcombine.low %v1133_v58, %v1149_v59  ;;  %v1213_v1 = vcombine.low %v1165_v60, %v1181_v61 }
 0x3a0   : > { %v1204_v2 = vrot.slane %v1190_v62, %v5093_v41  ;;  %v1228_v3 = vrot.slane %v1214_v63, %v5093_v41  ;;  %v1197_v4 = vrot.slane %v1189_v0, %v5093_v41  ;;  %v1221_v5 = vrot.slane %v1213_v1, %v5093_v41 }
 0x3a2   : > { %v1239_v6 = vcombine.low %v1204_v2, %v1228_v3  ;;  %v1237_v7 = vcombine.low %v1197_v4, %v1221_v5  ;;  %v1240_v9 = vcombine.high %v1204_v2, %v1228_v3  ;;  %v1238_v10 = vcombine.high %v1197_v4, %v1221_v5  ;;  %v1695_v5 = vld [vmem:[%s5511_s6 + $0x18] sm:$0xff] }
 0x3a4   : > { %3736 = vmatpush3.xpose.msk.msra.mxu1 %vm1249_vm2, %v1239_v6  ;;  %v1694_v6 = vld [vmem:[%s5511_s6 + $0x10] sm:$0xff] }
 0x3a5   : > { %3740 = vmatprep.subr.mxu1 %v4629_v8 }
 0x3a7   : > { %3738 = vmatmul.mubr.msk.f32.vlgmr.msra.gmra.mxu1 %vm1249_vm2, %v1237_v7  ;;  %v1693_v7 = vld [vmem:[%s5511_s6 + $0x8] sm:$0xff] }
 0x3a8   : > { %3741 = vmatpush3.xpose.msk.msra.mxu1 %vm1249_vm2, %v1240_v9  ;;  %3742 = vmatprep.mubr.msk.f32.mxu1 %vm4630_vm1, %v4629_v8 }
 0x3a9   : > { %3750 = vmatprep.subr.mxu1 %v4629_v8 }
 0x3ab   : > { %3743 = vmatmul.mubr.msk.f32.vlgmr.msra.gmra.mxu1 %vm1249_vm2, %v1238_v10 }
 0x3ac   : > { %3752 = vmatprep.mubr.msk.f32.mxu1 %vm4630_vm1, %v4629_v8 }
 0x467   : > { %v1322_v12 = vpop.f32.mrf.mxu1 }
 0x468   : > { %v1323_v13 = vadd.f32 %v5123_v11, %v1322_v12 }
 0x469   : > { %v3739_v14 = vpop.f32.mrf.mxu1 }
 0x46a   : > { %v1403_v15 = vsel %vm1402_vm3, %v1323_v13, -inf }
 0x46b   : > { %1404 = vmax.xlane.f32.xlu1 %v1403_v15  ;;  %v1398_v16 = vpop.f32.mrf.mxu1 }
 0x46c   : > { %v1399_v17 = vadd.f32 %v5123_v11, %v1398_v16 }
 0x46d   : > { %v3744_v18 = vpop.f32.mrf.mxu1 }
 0x46e   : > { %v1406_v19 = vsel %vm1402_vm3, %v1399_v17, -inf }
 0x46f   : > { %1407 = vmax.xlane.f32.xlu0 %v1406_v19 }
 0x485   : > { %988 = vrot.lane.b32.xlu0 %v5081_v23, %s5540_s7 }
 0x4f4   : > { %v1405_v21 = vpop.xlane.xlu1 %1404 }
 0x4f5   : > { %v1409_v22 = vsub.f32 %v1323_v13, %v1405_v21 }
 0x4f7   : > { %v1411_v24 = vmul.f32 1.442695, %v1409_v22 }
 0x4f8   : > { %v1408_v25 = vpop.xlane.xlu0 %1407 }
 0x4f9   : > { %4088 = vpow2.f32 %v1411_v24  ;;  %v1410_v26 = vsub.f32 %v1399_v17, %v1408_v25 }
 0x4fb   : > { %v1413_v27 = vmul.f32 1.442695, %v1410_v26 }
 0x4fc   : > { %v989_v33 = vpop.permute.xlu0 %988 }
 0x4fd   : > { %4090 = vpow2.f32 %v1413_v27  ;;  %v1038_v36 = vcombine.high %v989_v33, %v4629_v8  ;;  %v1045_v38 = vrot.slane %v989_v33, %v5089_v35 }
 0x4ff   : > { %v1052_v42 = vrot.slane %v1038_v36, %v5089_v35 }
 0x506   : > { %v4089_v28 = vpop.eup %4088 }
 0x507   : > { %v1415_v29 = vsel %vm1402_vm3, %v4089_v28, 0.0 }
 0x508   : > { %1416 = vadd.xlane.f32.xlu1 %v1415_v29 }
 0x50a   : > { %v4091_v30 = vpop.eup %4090 }
 0x50b   : > { %v1418_v31 = vsel %vm1402_vm3, %v4091_v30, 0.0 }
 0x50c   : > { %1419 = vadd.xlane.f32.xlu1 %v1418_v31 }
 0x51d   : > { %985 = vrot.lane.b32.xlu1 %v5081_v23, %s4637_s26 }
 0x591   : > { %v1417_v32 = vpop.xlane.xlu1 %1416 }
 0x592   : > { %4092 = vrcp.f32 %v1417_v32 }
 0x595   : > { %v1420_v34 = vpop.xlane.xlu1 %1419 }
 0x596   : > { %4094 = vrcp.f32 %v1420_v34 }
 0x599   : > { %v986_v37 = vpop.permute.xlu1 %985 }
 0x59a   : > { %v1023_v39 = vcombine.high %v986_v37, %v4629_v8  ;;  %v1030_v40 = vrot.slane %v986_v37, %v5089_v35 }
 0x59c   : > { %v1037_v43 = vrot.slane %v1023_v39, %v5089_v35  ;;  %v1085_v44 = vcombine.low %v1030_v40, %v1045_v38  ;;  %v1086_v23 = vcombine.high %v1030_v40, %v1045_v38 }
 0x59e   : > { %v1093_v45 = vrot.slane %v1085_v44, %v5093_v41  ;;  %v1100_v46 = vrot.slane %v1086_v23, %v5093_v41  ;;  %v1101_v47 = vcombine.low %v1037_v43, %v1052_v42  ;;  %v1102_v48 = vcombine.high %v1037_v43, %v1052_v42 }
 0x59f   : > { %v4093_v61 = vpop.eup %4092 }
 0x5a0   : > { %v1109_v49 = vrot.slane %v1101_v47, %v5093_v41  ;;  %v1116_v50 = vrot.slane %v1102_v48, %v5093_v41  ;;  %v3571_v51 = vcombine.low %v1093_v45, %v1100_v46  ;;  %v3573_v52 = vcombine.high %v1093_v45, %v1100_v46 }
 0x5a1   : > { %v1423_v3 = vmul.f32 %v4093_v61, %v4089_v28  ;;  %v1692_v28 = vld [vmem:[%s5511_s6] sm:$0xff] }
 0x5a2   : > { %v1140_v53 = vrot.slane %v3571_v51, %v5089_v35  ;;  %v1156_v54 = vrot.slane %v3573_v52, %v5089_v35  ;;  %v3575_v55 = vcombine.low %v1109_v49, %v1116_v50  ;;  %v3577_v56 = vcombine.high %v1109_v49, %v1116_v50  ;;  %v3588_v49 = vld [vmem:[#allocation11] ss:$0 sm:$0xff]  ;;  %v1807_v61 = vld [vmem:[%s5597_s14] sm:$0xff] }
 0x5a3   : > { %v4095_v62 = vpop.eup %4094 }
 0x5a4   : > { %v1172_v57 = vrot.slane %v3575_v55, %v5089_v35  ;;  %v1188_v58 = vrot.slane %v3577_v56, %v5089_v35  ;;  %v1205_v59 = vcombine.low %v1140_v53, %v1156_v54  ;;  %v1424_v4 = vmul.f32 %v4095_v62, %v4091_v30 }
 0x5a6   : > { %v1229_v60 = vcombine.low %v1172_v57, %v1188_v58  ;;  %v1212_v63 = vrot.slane %v1205_v59, %v5093_v41  ;;  %v1810_v59 = vld [vmem:[%s5597_s14 + $0x18] sm:$0xff] }
 0x5a8   : > { %v1236_v0 = vrot.slane %v1229_v60, %v5093_v41  ;;  %v1808_v60 = vld [vmem:[%s5597_s14 + $0x8] sm:$0xff] }
 0x5aa   : > { %v1241_v1 = vcombine.low %v1212_v63, %v1236_v0  ;;  %v1242_v2 = vcombine.high %v1212_v63, %v1236_v0 }
 0x5ac   : > { %3746 = vmatpush3.msra.mxu0 %v1241_v1  ;;  %3751 = vmatpush3.msra.mxu1 %v1242_v2  ;;  %v3589_v2 = vld [vmem:[#allocation13] ss:$0 sm:$0xff] }
 0x5ad   : > { %3748 = vmatmul.mubr.msk.f32.vlgmr.msra.gmra.mxu0 %vm1402_vm3, %v1423_v3  ;;  %3753 = vmatmul.mubr.msk.f32.vlgmr.msra.gmra.mxu1 %vm1402_vm3, %v1424_v4  ;;  %v3590_v4 = vld [vmem:[#allocation14] ss:$0 sm:$0xff] }
 0x5ae   : > { %3755 = vmatprep.subr.mxu0 %v4629_v8  ;;  %3763 = vmatprep.mubr.msk.f32.mxu0 %vm4630_vm1, %v4629_v8 }
 0x5af   : > { %3766 = vmatprep.subr.mxu1 %v4629_v8  ;;  %3774 = vmatprep.mubr.msk.f32.mxu1 %vm4630_vm1, %v4629_v8 }
 0x5b0   : > { %3756 = vmatpush3.msra.mxu0 %v1695_v5  ;;  %3767 = vmatpush3.msra.mxu1 %v1810_v59 }
 0x5b1   : > { %3757 = vmatprep.subr.mxu0 %v4629_v8  ;;  %3768 = vmatprep.subr.mxu1 %v4629_v8 }
 0x5b2   : > { %3758 = vmatpush3.msra.mxu0 %v1694_v6 }
 0x5b3   : > { %3759 = vmatprep.subr.mxu0 %v4629_v8 }
 0x5b4   : > { %3760 = vmatpush3.msra.mxu0 %v1693_v7  ;;  %v1907_v7 = vld [vmem:[%s5598_s12 + $0x38] sm:$0xff] }
 0x5b5   : > { %3761 = vmatprep.subr.mxu0 %v4629_v8 }
 0x5b6   : > { %3762 = vmatpush3.msra.mxu0 %v1692_v28 }
 0x5b7   : > { %3777 = vmatprep.subr.mxu0 %v4629_v8 }
 0x66d   : > { %v1494_v9 = vpop.f32.mrf.mxu0  ;;  %v1567_v10 = vpop.f32.mrf.mxu1 }
 0x66e   : > { %v1571_v12 = vcombine.high %v1494_v9, %v4629_v8  ;;  %v1578_v13 = vrot.slane %v1494_v9, %v5089_v35  ;;  %v1586_v14 = vcombine.high %v1567_v10, %v4629_v8  ;;  %v1593_v15 = vrot.slane %v1567_v10, %v5089_v35  ;;  %v1906_v9 = vld [vmem:[%s5598_s12 + $0x30] sm:$0xff]  ;;  %v1905_v10 = vld [vmem:[%s5598_s12 + $0x28] sm:$0xff] }
 0x66f   : > { %v3749_v16 = vpop.f32.mrf.mxu0  ;;  %v3754_v17 = vpop.f32.mrf.mxu1 }
 0x670   : > { %v1585_v18 = vrot.slane %v1571_v12, %v5089_v35  ;;  %v1600_v19 = vrot.slane %v1586_v14, %v5089_v35  ;;  %v1601_v21 = vcombine.low %v1578_v13, %v1593_v15  ;;  %v1602_v22 = vcombine.high %v1578_v13, %v1593_v15  ;;  %v1904_v12 = vld [vmem:[%s5598_s12 + $0x20] sm:$0xff]  ;;  %v1903_v13 = vld [vmem:[%s5598_s12 + $0x18] sm:$0xff]  ;;  %v1902_v14 = vld [vmem:[%s5598_s12 + $0x10] sm:$0xff] }
 0x671   : > { %v1901_v15 = vld [vmem:[%s5598_s12 + $0x8] sm:$0xff]  ;;  %v1900_v16 = vld [vmem:[%s5598_s12] sm:$0xff]  ;;  %v3591_v17 = vld [vmem:[#allocation16] ss:$0 sm:$0xff] }
 0x672   : > { %v1609_v24 = vrot.slane %v1601_v21, %v5093_v41  ;;  %v1616_v25 = vrot.slane %v1602_v22, %v5093_v41  ;;  %v1617_v26 = vcombine.low %v1585_v18, %v1600_v19  ;;  %v1618_v27 = vcombine.high %v1585_v18, %v1600_v19 }
 0x674   : > { %v1625_v29 = vrot.slane %v1617_v26, %v5093_v41  ;;  %v1632_v30 = vrot.slane %v1618_v27, %v5093_v41  ;;  %v1637_v31 = vcombine.low %v1609_v24, %v1616_v25  ;;  %v3585_v32 = vcombine.high %v1609_v24, %v1616_v25 }
 0x676   : > { %v1644_v33 = vrot.slane %v1637_v31, %v5089_v35  ;;  %v1652_v34 = vrot.slane %v3585_v32, %v5089_v35  ;;  %v1653_v36 = vcombine.low %v1625_v29, %v1632_v30  ;;  %v3586_v37 = vcombine.high %v1625_v29, %v1632_v30 }
 0x678   : > { %v1660_v38 = vrot.slane %v1653_v36, %v5089_v35  ;;  %v1668_v39 = vrot.slane %v3586_v37, %v5089_v35  ;;  %v1669_v40 = vcombine.low %v1644_v33, %v1652_v34  ;;  %v3594_v33 = vld [vmem:[#allocation17] ss:$0 sm:$0xff] }
 0x67a   : > { %v1677_v42 = vcombine.low %v1660_v38, %v1668_v39  ;;  %v1676_v43 = vrot.slane %v1669_v40, %v5093_v41 }
 0x67c   : > { %v1684_v44 = vrot.slane %v1677_v42, %v5093_v41 }
 0x67e   : > { %v1686_v23 = vcombine.high %v1676_v43, %v1684_v44  ;;  %v1685_v45 = vcombine.low %v1676_v43, %v1684_v44 }
 0x680   : > { %1688 = vrot.lane.b32.xlu1 %v1686_v23, %s5539_s0  ;;  %v3600_v23 = vld [vmem:[%s5596_s29 + $0x38] sm:$0xff] }
 0x6f2   : > { %v1689_v46 = vpop.permute.xlu1 %1688 }
 0x6f3   : > { %v1691_v47 = vsel %vm1249_vm2, %v1685_v45, %v1689_v46  ;;  %v3599_v45 = vld [vmem:[%s5596_s29 + $0x30] sm:$0xff]  ;;  %v3598_v46 = vld [vmem:[%s5596_s29 + $0x28] sm:$0xff] }
 0x6f4   : > { %3764 = vmatmul.mubr.msk.f32.vlgmr.msra.gmra.mxu0 %vm862_vm0, %v1691_v47  ;;  %v3597_v47 = vld [vmem:[%s5596_s29 + $0x20] sm:$0xff] }
 0x6f5   : > { %3793 = vmatprep.mubr.msk.f32.mxu0 %vm4630_vm1, %v4629_v8  ;;  %3778 = vmatpush3.msra.mxu0 %v1907_v7 }
 0x6f6   : > { %3779 = vmatprep.subr.mxu0 %v4629_v8 }
 0x6f7   : > { %3780 = vmatpush3.msra.mxu0 %v1906_v9 }
 0x6f8   : > { %3781 = vmatprep.subr.mxu0 %v4629_v8 }
 0x6f9   : > { %3782 = vmatpush3.msra.mxu0 %v1905_v10 }
 0x6fa   : > { %3783 = vmatprep.subr.mxu0 %v4629_v8 }
 0x6fb   : > { %3784 = vmatpush3.msra.mxu0 %v1904_v12 }
 0x6fc   : > { %3785 = vmatprep.subr.mxu0 %v4629_v8 }
 0x6fd   : > { %3786 = vmatpush3.msra.mxu0 %v1903_v13 }
 0x6fe   : > { %3787 = vmatprep.subr.mxu0 %v4629_v8 }
 0x6ff   : > { %3788 = vmatpush3.msra.mxu0 %v1902_v14 }
 0x700   : > { %3789 = vmatprep.subr.mxu0 %v4629_v8 }
 0x701   : > { %3790 = vmatpush3.msra.mxu0 %v1901_v15 }
 0x702   : > { %3791 = vmatprep.subr.mxu0 %v4629_v8 }
 0x703   : > { %3792 = vmatpush3.msra.mxu0 %v1900_v16 }
 0x704   : > { %3817 = vmatprep.subr.mxu0 %v4629_v8 }
 0x7b4   : > { %v1765_v48 = vpop.f32.mrf.mxu0 }
 0x7b5   : > { %v1769_v50 = vadd.f32 %v1765_v48, %v5075_v20  ;;  %v1809_v20 = vld [vmem:[%s5597_s14 + $0x10] sm:$0xff] }
 0x7b6   : > { %v3765_v51 = vpop.f32.mrf.mxu0  ;;  %3769 = vmatpush3.msra.mxu1 %v1809_v20 }
 0x7b7   : > { %v1777_v52 = vadd.f32 %v3588_v49, %v1769_v50  ;;  %3770 = vmatprep.subr.mxu1 %v4629_v8 }
 0x7b8   : > { %3771 = vmatpush3.msra.mxu1 %v1808_v60 }
 0x7b9   : > { %v1780_v53 = vsel %vm862_vm0, %v1777_v52, 0.0  ;;  %3772 = vmatprep.subr.mxu1 %v4629_v8 }
 0x7ba   : > { %1781 = vadd.xlane.f32.xlu1 %v1780_v53  ;;  %3773 = vmatpush3.msra.mxu1 %v1807_v61 }
 0x7bb   : > { %3796 = vmatprep.subr.mxu1 %v4629_v8 }
 0x843   : > { %v1782_v54 = vpop.xlane.xlu1 %1781 }
 0x844   : > { %v1783_v55 = vmul.f32 0.03125, %v1782_v54  ;;  %v3596_v54 = vld [vmem:[#allocation20] ss:$0 sm:$0xff] }
 0x846   : > { %v1784_v56 = vsub.f32 %v1777_v52, %v1783_v55  ;;  %v3595_v52 = vld [vmem:[#allocation19] ss:$0 sm:$0xff] }
 0x848   : > { %v1785_v57 = vmul.f32 %v1784_v56, %v1784_v56 }
 0x84a   : > { %v1786_v58 = vsel %vm862_vm0, %v1785_v57, 0.0  ;;  %v3601_v57 = vld [vmem:[#allocation10 + $0x1] ss:$0 sm:$0xff] }
 0x84b   : > { %1787 = vadd.xlane.f32.xlu0 %v1786_v58 }
 0x8d4   : > { %v1788_v62 = vpop.xlane.xlu0 %1787 }
 0x8d5   : > { %v1789_v63 = vmul.f32 0.03125, %v1788_v62 }
 0x8d7   : > { %v1790_v0 = vadd.f32 1e-12, %v1789_v63 }
 0x8d9   : > { %4096 = vrsqrt.f32 %v1790_v0 }
 0x8e6   : > { %v4097_v1 = vpop.eup %4096 }
 0x8e7   : > { %v1792_v3 = vmul.f32 %v4097_v1, %v1784_v56 }
 0x8e9   : > { %v1799_v5 = vmul.f32 %v3589_v2, %v1792_v3 }
 0x8eb   : > { %v1806_v6 = vadd.f32 %v3590_v4, %v1799_v5 }
 0x8ed   : > { %3775 = vmatmul.mubr.msk.f32.vlgmr.msra.gmra.mxu1 %vm862_vm0, %v1806_v6 }
 0x8ee   : > { %3804 = vmatprep.mubr.msk.f32.mxu1 %vm4630_vm1, %v4629_v8  ;;  %3797 = vmatpush3.msra.mxu1 %v3600_v23 }
 0x8ef   : > { %3798 = vmatprep.subr.mxu1 %v4629_v8 }
 0x8f0   : > { %3799 = vmatpush3.msra.mxu1 %v3599_v45 }
 0x8f1   : > { %3800 = vmatprep.subr.mxu1 %v4629_v8 }
 0x8f2   : > { %3801 = vmatpush3.msra.mxu1 %v3598_v46 }
 0x8f3   : > { %3802 = vmatprep.subr.mxu1 %v4629_v8 }
 0x8f4   : > { %3803 = vmatpush3.msra.mxu1 %v3597_v47 }
 0x8f5   : > { %3807 = vmatprep.subr.mxu1 %v4629_v8 }
 0x9ad   : > { %v1887_v18 = vpop.f32.mrf.mxu1 }
 0x9ae   : > { %v1888_v19 = vadd.f32 %v3591_v17, %v1887_v18 }
 0x9af   : > { %v3776_v21 = vpop.f32.mrf.mxu1 }
 0x9b0   : > { %v1891_v22 = vmul.f32 %v1888_v19, %v1888_v19 }
 0x9b2   : > { %v1892_v24 = vmul.f32 %v1891_v22, %v1888_v19 }
 0x9b4   : > { %v1893_v25 = vmul.f32 0.044715, %v1892_v24 }
 0x9b6   : > { %v1894_v26 = vadd.f32 %v1893_v25, %v1888_v19 }
 0x9b8   : > { %v1895_v27 = vmul.f32 0.7978846, %v1894_v26 }
 0x9ba   : > { %4098 = vtanh.f32 %v1895_v27 }
 0x9c7   : > { %v4099_v28 = vpop.eup %4098 }
 0x9c8   : > { %v1897_v29 = vadd.f32 1.0, %v4099_v28 }
 0x9ca   : > { %v1898_v30 = vmul.f32 0.5, %v1897_v29 }
 0x9cc   : > { %v1899_v31 = vmul.f32 %v1898_v30, %v1888_v19 }
 0x9ce   : > { %3794 = vmatmul.mubr.msk.f32.vlgmr.msra.gmra.mxu0 %vm1908_vm4, %v1899_v31 }
 0x9cf   : > { %3819 = vmatprep.mubr.msk.f32.mxu0 %vm4630_vm1, %v4629_v8 }
 0xa8e   : > { %v1978_v32 = vpop.f32.mrf.mxu0 }
 0xa8f   : > { %v1982_v34 = vadd.f32 %v1978_v32, %v1806_v6 }
 0xa90   : > { %v3795_v36 = vpop.f32.mrf.mxu0 }
 0xa91   : > { %v1990_v37 = vadd.f32 %v3594_v33, %v1982_v34 }
 0xa93   : > { %v1993_v38 = vsel %vm862_vm0, %v1990_v37, 0.0 }
 0xa94   : > { %1994 = vadd.xlane.f32.xlu1 %v1993_v38 }
 0xb1d   : > { %v1995_v39 = vpop.xlane.xlu1 %1994 }
 0xb1e   : > { %v1996_v40 = vmul.f32 0.03125, %v1995_v39 }
 0xb20   : > { %v1997_v42 = vsub.f32 %v1990_v37, %v1996_v40 }
 0xb22   : > { %v1998_v43 = vmul.f32 %v1997_v42, %v1997_v42 }
 0xb24   : > { %v1999_v44 = vsel %vm862_vm0, %v1998_v43, 0.0 }
 0xb25   : > { %2000 = vadd.xlane.f32.xlu1 %v1999_v44 }
 0xbae   : > { %v2001_v48 = vpop.xlane.xlu1 %2000 }
 0xbaf   : > { %v2002_v49 = vmul.f32 0.03125, %v2001_v48 }
 0xbb1   : > { %v2003_v50 = vadd.f32 1e-12, %v2002_v49 }
 0xbb3   : > { %4100 = vrsqrt.f32 %v2003_v50 }
 0xbc0   : > { %v4101_v51 = vpop.eup %4100 }
 0xbc1   : > { %v2005_v53 = vmul.f32 %v4101_v51, %v1997_v42 }
 0xbc3   : > { %v2012_v55 = vmul.f32 %v3595_v52, %v2005_v53 }
 0xbc5   : > { %v5271_v56 = vadd.f32 %v3596_v54, %v2012_v55 }
 0xbc7   : > { %3805 = vmatmul.mubr.msk.f32.vlgmr.msra.gmra.mxu1 %vm862_vm0, %v5271_v56 }
 0xbc8   : > { %3809 = vmatprep.mubr.msk.f32.mxu1 %vm4630_vm1, %v4629_v8 }
 0xc87   : > { %v2102_v58 = vpop.f32.mrf.mxu1 }
 0xc88   : > { %v5277_v59 = vadd.f32 %v3601_v57, %v2102_v58 }
 0xc89   : > { %v3806_v20 = vpop.f32.mrf.mxu1 }
 0xc8a   : > { %2110 = vrot.lane.b32.xlu1 %v5277_v59, %s4633_s10  ;;  %2107 = vrot.lane.b32.xlu0 %v5277_v59, %s4632_s9  ;;  %s5602_s9 = sld [smem:[#allocation53_spill]] }
 0xc8e   : > { %2113 = vrot.lane.b32.xlu1 %v5277_v59, %s4631_s5  ;;  %s5599_s5 = smov 48  }
 0xc90   : > { %s5468_s10 = scalar_lea.hbm %s5602_s9, %s3647_s2 }
 0xcfc   : > { %v2111_v60 = vpop.permute.xlu1 %2110  ;;  %v2108_v63 = vpop.permute.xlu0 %2107 }
 0xcfd   : > { %v2122_v61 = vcombine.low %v5277_v59, %v2111_v60  ;;  %v2123_v62 = vcombine.high %v5277_v59, %v2111_v60 }
 0xcff   : > { %v2130_v3 = vrot.slane %v2122_v61, %v5089_v35  ;;  %v2137_v4 = vrot.slane %v2123_v62, %v5089_v35 }
 0xd00   : > { %v2114_v0 = vpop.permute.xlu1 %2113 }
 0xd01   : > { %v2138_v1 = vcombine.low %v2108_v63, %v2114_v0  ;;  %v2139_v2 = vcombine.high %v2108_v63, %v2114_v0 }
 0xd03   : > { %v2146_v5 = vrot.slane %v2138_v1, %v5089_v35  ;;  %v2153_v6 = vrot.slane %v2139_v2, %v5089_v35 }
 0xd05   : > { %v2184_v7 = vcombine.low %v2130_v3, %v2146_v5  ;;  %v2185_v9 = vcombine.high %v2130_v3, %v2146_v5  ;;  %v2200_v10 = vcombine.low %v2137_v4, %v2153_v6  ;;  %v2201_v12 = vcombine.high %v2137_v4, %v2153_v6 }
 0xd07   : > { %v2192_v13 = vrot.slane %v2184_v7, %v5093_v41  ;;  %v2199_v14 = vrot.slane %v2185_v9, %v5093_v41  ;;  %v2208_v15 = vrot.slane %v2200_v10, %v5093_v41  ;;  %v2215_v16 = vrot.slane %v2201_v12, %v5093_v41 }
 0xd09   : > { %v3603_v17 = vcombine.low %v2192_v13, %v2199_v14  ;;  %v3605_v18 = vcombine.high %v2192_v13, %v2199_v14  ;;  %v3607_v19 = vcombine.low %v2208_v15, %v2215_v16  ;;  %v3609_v21 = vcombine.high %v2208_v15, %v2215_v16 }
 0xd0b   : > { %v2264_v22 = vrot.slane %v3603_v17, %v5089_v35  ;;  %v2280_v24 = vrot.slane %v3605_v18, %v5089_v35  ;;  %v2296_v25 = vrot.slane %v3607_v19, %v5089_v35  ;;  %v2312_v26 = vrot.slane %v3609_v21, %v5089_v35 }
 0xd0d   : > { %v2320_v27 = vcombine.low %v2264_v22, %v2280_v24  ;;  %v2321_v28 = vcombine.high %v2264_v22, %v2280_v24  ;;  %v2344_v29 = vcombine.low %v2296_v25, %v2312_v26  ;;  %v2345_v30 = vcombine.high %v2296_v25, %v2312_v26 }
 0xd0f   : > { %v2335_v31 = vrot.slane %v2321_v28, %v5093_v41  ;;  %v2359_v32 = vrot.slane %v2345_v30, %v5093_v41  ;;  %v2328_v33 = vrot.slane %v2320_v27, %v5093_v41  ;;  %v2352_v34 = vrot.slane %v2344_v29, %v5093_v41 }
 0xd11   : > { %v2370_v36 = vcombine.low %v2335_v31, %v2359_v32  ;;  %v2368_v37 = vcombine.low %v2328_v33, %v2352_v34  ;;  %v2371_v38 = vcombine.high %v2335_v31, %v2359_v32  ;;  %v2369_v39 = vcombine.high %v2328_v33, %v2352_v34  ;;  %v3622_v33 = vld [vmem:[%s5511_s6 + $0x38] sm:$0xff]  ;;  %v3621_v34 = vld [vmem:[%s5511_s6 + $0x30] sm:$0xff] }
 0xd13   : > { %3808 = vmatpush3.xpose.msk.msra.mxu1 %vm1249_vm2, %v2370_v36  ;;  %v3620_v36 = vld [vmem:[%s5511_s6 + $0x28] sm:$0xff] }
 0xd14   : > { %3812 = vmatprep.subr.mxu1 %v4629_v8 }
 0xd16   : > { %3810 = vmatmul.mubr.msk.f32.vlgmr.msra.gmra.mxu1 %vm1249_vm2, %v2368_v37 }
 0xd17   : > { %3813 = vmatpush3.xpose.msk.msra.mxu1 %vm1249_vm2, %v2371_v38  ;;  %3814 = vmatprep.mubr.msk.f32.mxu1 %vm4630_vm1, %v4629_v8 }
 0xd18   : > { %3822 = vmatprep.subr.mxu1 %v4629_v8 }
 0xd1a   : > { %3815 = vmatmul.mubr.msk.f32.vlgmr.msra.gmra.mxu1 %vm1249_vm2, %v2369_v39 }
 0xd1b   : > { %3824 = vmatprep.mubr.msk.f32.mxu1 %vm4630_vm1, %v4629_v8 }
 0xdd6   : > { %v2446_v40 = vpop.f32.mrf.mxu1 }
 0xdd7   : > { %v2447_v42 = vadd.f32 %v5123_v11, %v2446_v40 }
 0xdd8   : > { %v3811_v43 = vpop.f32.mrf.mxu1 }
 0xdd9   : > { %v2526_v44 = vsel %vm1402_vm3, %v2447_v42, -inf }
 0xdda   : > { %2527 = vmax.xlane.f32.xlu0 %v2526_v44  ;;  %v2522_v23 = vpop.f32.mrf.mxu1 }
 0xddb   : > { %v2523_v45 = vadd.f32 %v5123_v11, %v2522_v23 }
 0xddc   : > { %v3816_v46 = vpop.f32.mrf.mxu1 }
 0xddd   : > { %v2529_v47 = vsel %vm1402_vm3, %v2523_v45, -inf }
 0xdde   : > { %2530 = vmax.xlane.f32.xlu1 %v2529_v47 }
 0xdef   : > { %2116 = vrot.lane.b32.xlu1 %v5277_v59, %s4637_s26  ;;  %s3311_s26 = scalar_lea.sflag [#allocation4], %s5009_s15 }
 0xe63   : > { %v2528_v48 = vpop.xlane.xlu0 %2527 }
 0xe64   : > { %v2532_v49 = vsub.f32 %v2447_v42, %v2528_v48 }
 0xe66   : > { %v2534_v50 = vmul.f32 1.442695, %v2532_v49 }
 0xe67   : > { %v2531_v51 = vpop.xlane.xlu1 %2530 }
 0xe68   : > { %4102 = vpow2.f32 %v2534_v50  ;;  %v2533_v52 = vsub.f32 %v2523_v45, %v2531_v51 }
 0xe6a   : > { %v2536_v53 = vmul.f32 1.442695, %v2533_v52 }
 0xe6b   : > { %v2117_v20 = vpop.permute.xlu1 %2116 }
 0xe6c   : > { %4104 = vpow2.f32 %v2536_v53  ;;  %v2154_v61 = vcombine.high %v2117_v20, %v4629_v8  ;;  %v2161_v63 = vrot.slane %v2117_v20, %v5089_v35  ;;  %v3619_v53 = vld [vmem:[%s5511_s6 + $0x20] sm:$0xff] }
 0xe6e   : > { %v2168_v2 = vrot.slane %v2154_v61, %v5089_v35 }
 0xe75   : > { %v4103_v54 = vpop.eup %4102 }
 0xe76   : > { %v2538_v55 = vsel %vm1402_vm3, %v4103_v54, 0.0 }
 0xe77   : > { %2539 = vadd.xlane.f32.xlu0 %v2538_v55 }
 0xe79   : > { %v4105_v11 = vpop.eup %4104 }
 0xe7a   : > { %v2541_v57 = vsel %vm1402_vm3, %v4105_v11, 0.0 }
 0xe7b   : > { %2542 = vadd.xlane.f32.xlu0 %v2541_v57 }
 0xe91   : > { %2119 = vrot.lane.b32.xlu0 %v5277_v59, %s5599_s5  ;;  %s5601_s5 = sld [smem:[#allocation52_spill]] }
 0xf00   : > { %v2540_v58 = vpop.xlane.xlu0 %2539 }
 0xf01   : > { %4106 = vrcp.f32 %v2540_v58 }
 0xf04   : > { %v2543_v60 = vpop.xlane.xlu0 %2542 }
 0xf05   : > { %4108 = vrcp.f32 %v2543_v60 }
 0xf08   : > { %v2120_v62 = vpop.permute.xlu0 %2119 }
 0xf09   : > { %v2169_v0 = vcombine.high %v2120_v62, %v4629_v8  ;;  %v2176_v1 = vrot.slane %v2120_v62, %v5089_v35 }
 0xf0b   : > { %v2183_v3 = vrot.slane %v2169_v0, %v5089_v35  ;;  %v2216_v4 = vcombine.low %v2161_v63, %v2176_v1  ;;  %v2217_v59 = vcombine.high %v2161_v63, %v2176_v1 }
 0xf0d   : > { %v2224_v5 = vrot.slane %v2216_v4, %v5093_v41  ;;  %v2231_v6 = vrot.slane %v2217_v59, %v5093_v41  ;;  %v2232_v7 = vcombine.low %v2168_v2, %v2183_v3  ;;  %v2233_v9 = vcombine.high %v2168_v2, %v2183_v3 }
 0xf0e   : > { %v4107_v25 = vpop.eup %4106 }
 0xf0f   : > { %v2240_v10 = vrot.slane %v2232_v7, %v5093_v41  ;;  %v2247_v12 = vrot.slane %v2233_v9, %v5093_v41  ;;  %v3604_v13 = vcombine.low %v2224_v5, %v2231_v6  ;;  %v3606_v14 = vcombine.high %v2224_v5, %v2231_v6 }
 0xf10   : > { %v2546_v31 = vmul.f32 %v4107_v25, %v4103_v54 }
 0xf11   : > { %v2271_v15 = vrot.slane %v3604_v13, %v5089_v35  ;;  %v2287_v16 = vrot.slane %v3606_v14, %v5089_v35  ;;  %v3608_v17 = vcombine.low %v2240_v10, %v2247_v12  ;;  %v3610_v18 = vcombine.high %v2240_v10, %v2247_v12 }
 0xf12   : > { %v4109_v26 = vpop.eup %4108 }
 0xf13   : > { %v2303_v19 = vrot.slane %v3608_v17, %v5089_v35  ;;  %v2319_v21 = vrot.slane %v3610_v18, %v5089_v35  ;;  %v2336_v22 = vcombine.low %v2271_v15, %v2287_v16  ;;  %v2547_v32 = vmul.f32 %v4109_v26, %v4105_v11  ;;  %v3630_v18 = vld [vmem:[%s5597_s14 + $0x38] sm:$0xff] }
 0xf15   : > { %v2360_v24 = vcombine.low %v2303_v19, %v2319_v21  ;;  %v2343_v27 = vrot.slane %v2336_v22, %v5093_v41  ;;  %v3628_v19 = vld [vmem:[%s5597_s14 + $0x28] sm:$0xff]  ;;  %v3627_v21 = vld [vmem:[%s5597_s14 + $0x20] sm:$0xff] }
 0xf17   : > { %v2367_v28 = vrot.slane %v2360_v24, %v5093_v41 }
 0xf19   : > { %v2372_v29 = vcombine.low %v2343_v27, %v2367_v28  ;;  %v2373_v30 = vcombine.high %v2343_v27, %v2367_v28  ;;  %v3625_v27 = vld [vmem:[#allocation13 + $0x1] ss:$0 sm:$0xff] }
 0xf1b   : > { %3818 = vmatpush3.msra.mxu0 %v2372_v29  ;;  %3823 = vmatpush3.msra.mxu1 %v2373_v30  ;;  %v3626_v29 = vld [vmem:[#allocation14 + $0x1] ss:$0 sm:$0xff] }
 0xf1c   : > { %3820 = vmatmul.mubr.msk.f32.vlgmr.msra.gmra.mxu0 %vm1402_vm3, %v2546_v31  ;;  %3825 = vmatmul.mubr.msk.f32.vlgmr.msra.gmra.mxu1 %vm1402_vm3, %v2547_v32  ;;  %v3640_v32 = vld [vmem:[%s5598_s12 + $0x78] sm:$0xff] }
 0xf1d   : > { %3827 = vmatprep.subr.mxu0 %v4629_v8  ;;  %3835 = vmatprep.mubr.msk.f32.mxu0 %vm4630_vm1, %v4629_v8 }
 0xf1e   : > { %3838 = vmatprep.subr.mxu1 %v4629_v8  ;;  %3846 = vmatprep.mubr.msk.f32.mxu1 %vm4630_vm1, %v4629_v8 }
 0xf1f   : > { %3828 = vmatpush3.msra.mxu0 %v3622_v33  ;;  %3839 = vmatpush3.msra.mxu1 %v3630_v18  ;;  %v3639_v33 = vld [vmem:[%s5598_s12 + $0x70] sm:$0xff] }
 0xf20   : > { %3829 = vmatprep.subr.mxu0 %v4629_v8  ;;  %3840 = vmatprep.subr.mxu1 %v4629_v8 }
 0xf21   : > { %3830 = vmatpush3.msra.mxu0 %v3621_v34  ;;  %v3638_v34 = vld [vmem:[%s5598_s12 + $0x68] sm:$0xff] }
 0xf22   : > { %3831 = vmatprep.subr.mxu0 %v4629_v8 }
 0xf23   : > { %3832 = vmatpush3.msra.mxu0 %v3620_v36  ;;  %v3637_v36 = vld [vmem:[%s5598_s12 + $0x60] sm:$0xff] }
 0xf24   : > { %3833 = vmatprep.subr.mxu0 %v4629_v8 }
 0xf25   : > { %3834 = vmatpush3.msra.mxu0 %v3619_v53 }
 0xf26   : > { %3849 = vmatprep.subr.mxu0 %v4629_v8 }
 0xfdc   : > { %v2617_v37 = vpop.f32.mrf.mxu0  ;;  %v2690_v38 = vpop.f32.mrf.mxu1 }
 0xfdd   : > { %v2694_v39 = vcombine.high %v2617_v37, %v4629_v8  ;;  %v2701_v40 = vrot.slane %v2617_v37, %v5089_v35  ;;  %v2709_v42 = vcombine.high %v2690_v38, %v4629_v8  ;;  %v2716_v43 = vrot.slane %v2690_v38, %v5089_v35  ;;  %v3636_v37 = vld [vmem:[%s5598_s12 + $0x58] sm:$0xff]  ;;  %v3635_v38 = vld [vmem:[%s5598_s12 + $0x50] sm:$0xff] }
 0xfde   : > { %v3821_v44 = vpop.f32.mrf.mxu0  ;;  %v3826_v23 = vpop.f32.mrf.mxu1 }
 0xfdf   : > { %v2708_v45 = vrot.slane %v2694_v39, %v5089_v35  ;;  %v2723_v46 = vrot.slane %v2709_v42, %v5089_v35  ;;  %v2724_v47 = vcombine.low %v2701_v40, %v2716_v43  ;;  %v2725_v48 = vcombine.high %v2701_v40, %v2716_v43  ;;  %v3634_v39 = vld [vmem:[%s5598_s12 + $0x48] sm:$0xff]  ;;  %v3633_v40 = vld [vmem:[%s5598_s12 + $0x40] sm:$0xff]  ;;  %v3631_v42 = vld [vmem:[#allocation16 + $0x1] ss:$0 sm:$0xff] }
 0xfe1   : > { %v2732_v49 = vrot.slane %v2724_v47, %v5093_v41  ;;  %v2739_v50 = vrot.slane %v2725_v48, %v5093_v41  ;;  %v2740_v51 = vcombine.low %v2708_v45, %v2723_v46  ;;  %v2741_v52 = vcombine.high %v2708_v45, %v2723_v46 }
 0xfe3   : > { %v2748_v54 = vrot.slane %v2740_v51, %v5093_v41  ;;  %v2755_v55 = vrot.slane %v2741_v52, %v5093_v41  ;;  %v2760_v11 = vcombine.low %v2732_v49, %v2739_v50  ;;  %v3617_v57 = vcombine.high %v2732_v49, %v2739_v50 }
 0xfe5   : > { %v2767_v58 = vrot.slane %v2760_v11, %v5089_v35  ;;  %v2775_v20 = vrot.slane %v3617_v57, %v5089_v35  ;;  %v2776_v60 = vcombine.low %v2748_v54, %v2755_v55  ;;  %v3618_v61 = vcombine.high %v2748_v54, %v2755_v55  ;;  %v3642_v55 = vld [vmem:[#allocation17 + $0x1] ss:$0 sm:$0xff] }
 0xfe7   : > { %v2783_v62 = vrot.slane %v2776_v60, %v5089_v35  ;;  %v2791_v63 = vrot.slane %v3618_v61, %v5089_v35  ;;  %v2792_v0 = vcombine.low %v2767_v58, %v2775_v20  ;;  %v3624_v35 = vld [vmem:[#allocation11 + $0x1] ss:$0 sm:$0xff] }
 0xfe9   : > { %v2800_v1 = vcombine.low %v2783_v62, %v2791_v63  ;;  %v2799_v2 = vrot.slane %v2792_v0, %v5093_v41 }
 0xfeb   : > { %v2807_v3 = vrot.slane %v2800_v1, %v5093_v41  ;;  %v3155_v1 = vld [vmem:[#allocation22 + $0x18] sm:$0xff] }
 0xfed   : > { %v2809_v4 = vcombine.high %v2799_v2, %v2807_v3  ;;  %v2808_v59 = vcombine.low %v2799_v2, %v2807_v3  ;;  %v3154_v2 = vld [vmem:[#allocation22 + $0x10] sm:$0xff]  ;;  %v3153_v3 = vld [vmem:[#allocation22 + $0x8] sm:$0xff] }
 0xfef   : > { %2811 = vrot.lane.b32.xlu1 %v2809_v4, %s5600_s20  ;;  %v3152_v4 = vld [vmem:[#allocation22] sm:$0xff]  ;;  %s3323_s20 = sshll.u32 %s857_s25, 4  ;;  %s3324_s20 = int_to_ptr.vmem [resolvable:$true] %s3323_s20 }
 0xff0   : > { %s4512_s7 = scalar_lea.vmem %s3324_s20, 16  ;;  %p4519_p5 = scmp.lt.s32.totalorder %s3324_s20, %s4517_s3 }
 0xff1   : > { %p4513_p13 = scmp.ne.s32.totalorder %s3324_s20, %s4512_s7  ;;  %p4520_p8 = scmp.lt.s32.totalorder %s4518_s11, %s4512_s7 }
 0xff3   : > { %p4514_p4 = pnand %p4513_p13, %p5603_p3  ;;  %p4521_p10 = por %p4520_p8, %p4519_p5 }
 0xff5   : > { %p4515_p2 = pneg %p4514_p4 }
 0xff7   : > { %p4522_p11 = pnand %p4521_p10, %p4515_p2 }
0x1061   : > { %v2812_v5 = vpop.permute.xlu1 %2811 }
0x1062   : > { %v2814_v6 = vsel %vm1249_vm2, %v2808_v59, %v2812_v5 }
0x1063   : > { %3836 = vmatmul.mubr.msk.f32.vlgmr.msra.gmra.mxu0 %vm862_vm0, %v2814_v6 }
0x1064   : > { %3865 = vmatprep.mubr.msk.f32.mxu0 %vm4630_vm1, %v4629_v8  ;;  %3850 = vmatpush3.msra.mxu0 %v3640_v32 }
0x1065   : > { %3851 = vmatprep.subr.mxu0 %v4629_v8 }
0x1066   : > { %3852 = vmatpush3.msra.mxu0 %v3639_v33 }
0x1067   : > { %3853 = vmatprep.subr.mxu0 %v4629_v8 }
0x1068   : > { %3854 = vmatpush3.msra.mxu0 %v3638_v34 }
0x1069   : > { %3855 = vmatprep.subr.mxu0 %v4629_v8 }
0x106a   : > { %3856 = vmatpush3.msra.mxu0 %v3637_v36 }
0x106b   : > { %3857 = vmatprep.subr.mxu0 %v4629_v8 }
0x106c   : > { %3858 = vmatpush3.msra.mxu0 %v3636_v37 }
0x106d   : > { %3859 = vmatprep.subr.mxu0 %v4629_v8 }
0x106e   : > { %3860 = vmatpush3.msra.mxu0 %v3635_v38 }
0x106f   : > { %3861 = vmatprep.subr.mxu0 %v4629_v8 }
0x1070   : > { %3862 = vmatpush3.msra.mxu0 %v3634_v39 }
0x1071   : > { %3863 = vmatprep.subr.mxu0 %v4629_v8 }
0x1072   : > { %3864 = vmatpush3.msra.mxu0 %v3633_v40 }
0x1123   : > { %v2889_v7 = vpop.f32.mrf.mxu0 }
0x1124   : > { %v2893_v9 = vadd.f32 %v2889_v7, %v5271_v56  ;;  %v3629_v56 = vld [vmem:[%s5597_s14 + $0x30] sm:$0xff] }
0x1125   : > { %v3837_v10 = vpop.f32.mrf.mxu0  ;;  %3841 = vmatpush3.msra.mxu1 %v3629_v56 }
0x1126   : > { %v2902_v12 = vadd.f32 %v3624_v35, %v2893_v9  ;;  %3842 = vmatprep.subr.mxu1 %v4629_v8  ;;  %v3643_v35 = vld [vmem:[#allocation19 + $0x1] ss:$0 sm:$0xff]  ;;  %v3644_v10 = vld [vmem:[#allocation20 + $0x1] ss:$0 sm:$0xff] }
0x1127   : > { %3843 = vmatpush3.msra.mxu1 %v3628_v19 }
0x1128   : > { %v2907_v41 = vsel %vm862_vm0, %v2902_v12, 0.0  ;;  %3844 = vmatprep.subr.mxu1 %v4629_v8 }
0x1129   : > { %2908 = vadd.xlane.f32.xlu1 %v2907_v41  ;;  %3845 = vmatpush3.msra.mxu1 %v3627_v21 }
0x112a   : > { %3868 = vmatprep.subr.mxu1 %v4629_v8 }
0x11b2   : > { %v2909_v13 = vpop.xlane.xlu1 %2908 }
0x11b3   : > { %v2910_v14 = vmul.f32 0.03125, %v2909_v13  ;;  %v3234_v13 = vld [vmem:[%s5601_s5 + $0x18] sm:$0xff] }
0x11b5   : > { %v2911_v15 = vsub.f32 %v2902_v12, %v2910_v14  ;;  %v3233_v14 = vld [vmem:[%s5601_s5 + $0x10] sm:$0xff] }
0x11b7   : > { %v2912_v16 = vmul.f32 %v2911_v15, %v2911_v15 }
0x11b9   : > { %v2913_v17 = vsel %vm862_vm0, %v2912_v16, 0.0  ;;  %v3231_v16 = vld [vmem:[%s5601_s5] sm:$0xff] }
0x11ba   : > { %2914 = vadd.xlane.f32.xlu0 %v2913_v17  ;;  %v3156_v17 = vld [vmem:[#allocation23] sm:$0x1] }
0x1243   : > { %v2915_v22 = vpop.xlane.xlu0 %2914 }
0x1244   : > { %v2916_v24 = vmul.f32 0.03125, %v2915_v22  ;;  %v3235_v22 = vld [vmem:[#allocation25] sm:$0x1] }
0x1246   : > { %v2917_v25 = vadd.f32 1e-12, %v2916_v24 }
0x1248   : > { %4110 = vrsqrt.f32 %v2917_v25 }
0x1255   : > { %v4111_v26 = vpop.eup %4110 }
0x1256   : > { %v2919_v28 = vmul.f32 %v4111_v26, %v2911_v15  ;;  %v3232_v15 = vld [vmem:[%s5601_s5 + $0x8] sm:$0xff] }
0x1258   : > { %v2926_v30 = vmul.f32 %v3625_v27, %v2919_v28 }
0x125a   : > { %v2933_v31 = vadd.f32 %v3626_v29, %v2926_v30 }
0x125c   : > { %3847 = vmatmul.mubr.msk.f32.vlgmr.msra.gmra.mxu1 %vm862_vm0, %v2933_v31 }
0x125d   : > { %3876 = vmatprep.mubr.msk.f32.mxu1 %vm4630_vm1, %v4629_v8  ;;  %3869 = vmatpush3.msra.mxu1 %v3155_v1 }
0x125e   : > { %3870 = vmatprep.subr.mxu1 %v4629_v8 }
0x125f   : > { %3871 = vmatpush3.msra.mxu1 %v3154_v2 }
0x1260   : > { %3872 = vmatprep.subr.mxu1 %v4629_v8 }
0x1261   : > { %3873 = vmatpush3.msra.mxu1 %v3153_v3 }
0x1262   : > { %3874 = vmatprep.subr.mxu1 %v4629_v8 }
0x1263   : > { %3875 = vmatpush3.msra.mxu1 %v3152_v4 }
0x1264   : > { %3879 = vmatprep.subr.mxu1 %v4629_v8 }
0x131c   : > { %v3016_v43 = vpop.f32.mrf.mxu1 }
0x131d   : > { %v3017_v44 = vadd.f32 %v3631_v42, %v3016_v43 }
0x131e   : > { %v3848_v23 = vpop.f32.mrf.mxu1 }
0x131f   : > { %v3020_v45 = vmul.f32 %v3017_v44, %v3017_v44 }
0x1321   : > { %v3021_v46 = vmul.f32 %v3020_v45, %v3017_v44 }
0x1323   : > { %v3022_v47 = vmul.f32 0.044715, %v3021_v46 }
0x1325   : > { %v3023_v48 = vadd.f32 %v3022_v47, %v3017_v44 }
0x1327   : > { %v3024_v49 = vmul.f32 0.7978846, %v3023_v48 }
0x1329   : > { %4112 = vtanh.f32 %v3024_v49 }
0x1336   : > { %v4113_v50 = vpop.eup %4112 }
0x1337   : > { %v3026_v51 = vadd.f32 1.0, %v4113_v50 }
0x1339   : > { %v3027_v52 = vmul.f32 0.5, %v3026_v51 }
0x133b   : > { %v3028_v53 = vmul.f32 %v3027_v52, %v3017_v44 }
0x133d   : > { %3866 = vmatmul.mubr.msk.f32.vlgmr.msra.gmra.mxu0 %vm1908_vm4, %v3028_v53 }
0x13fd   : > { %v3107_v54 = vpop.f32.mrf.mxu0 }
0x13fe   : > { %v3111_v11 = vadd.f32 %v3107_v54, %v2933_v31 }
0x13ff   : > { %v3867_v57 = vpop.f32.mrf.mxu0 }
0x1400   : > { %v3120_v58 = vadd.f32 %v3642_v55, %v3111_v11 }
0x1402   : > { %v3125_v20 = vsel %vm862_vm0, %v3120_v58, 0.0 }
0x1403   : > { %3126 = vadd.xlane.f32.xlu0 %v3125_v20 }
0x148c   : > { %v3127_v60 = vpop.xlane.xlu0 %3126 }
0x148d   : > { %v3128_v61 = vmul.f32 0.03125, %v3127_v60 }
0x148f   : > { %v3129_v62 = vsub.f32 %v3120_v58, %v3128_v61 }
0x1491   : > { %v3130_v63 = vmul.f32 %v3129_v62, %v3129_v62 }
0x1493   : > { %v3131_v0 = vsel %vm862_vm0, %v3130_v63, 0.0 }
0x1494   : > { %3132 = vadd.xlane.f32.xlu1 %v3131_v0 }
0x151d   : > { %v3133_v59 = vpop.xlane.xlu1 %3132 }
0x151e   : > { %v3134_v5 = vmul.f32 0.03125, %v3133_v59 }
0x1520   : > { %v3135_v6 = vadd.f32 1e-12, %v3134_v5 }
0x1522   : > { %4114 = vrsqrt.f32 %v3135_v6 }
0x152f   : > { %v4115_v7 = vpop.eup %4114 }
0x1530   : > { %v3137_v9 = vmul.f32 %v4115_v7, %v3129_v62 }
0x1532   : > { %v3144_v12 = vmul.f32 %v3643_v35, %v3137_v9 }
0x1534   : > { %v3151_v41 = vadd.f32 %v3644_v10, %v3144_v12 }
0x1536   : > { %3877 = vmatmul.mubr.msk.f32.vlgmr.msra.gmra.mxu1 %vm862_vm0, %v3151_v41 }
0x1537   : > { %3887 = vmatprep.mubr.msk.f32.mxu1 %vm4630_vm1, %v4629_v8  ;;  %3880 = vmatpush3.msra.mxu1 %v3234_v13 }
0x1538   : > { %3881 = vmatprep.subr.mxu1 %v4629_v8 }
0x1539   : > { %3882 = vmatpush3.msra.mxu1 %v3233_v14 }
0x153a   : > { %3883 = vmatprep.subr.mxu1 %v4629_v8 }
0x153b   : > { %3884 = vmatpush3.msra.mxu1 %v3232_v15 }
0x153c   : > { %3885 = vmatprep.subr.mxu1 %v4629_v8 }
0x153d   : > { %3886 = vmatpush3.msra.mxu1 %v3231_v16 }
0x15f6   : > { %v3226_v18 = vpop.f32.mrf.mxu1 }
0x15f7   : > { %v3227_v56 = vadd.f32 %v3226_v18, %v3156_v17 }
0x15f8   : > { %v3878_v19 = vpop.f32.mrf.mxu1 }
0x15f9   : > { %4116 = vtanh.f32 %v3227_v56 }
0x1606   : > { %v4117_v21 = vpop.eup %4116 }
0x1607   : > { %3888 = vmatmul.mubr.msk.f32.vlgmr.msra.gmra.mxu1 %vm862_vm0, %v4117_v21 }
0x16c7   : > { %v3305_v24 = vpop.f32.mrf.mxu1 }
0x16c8   : > { %v3306_v25 = vadd.f32 %v3305_v24, %v3235_v22 }
0x16c9   : > { %v3889_v8 = vpop.f32.mrf.mxu1 }
0x16ca   : > { %3309 = vst [vmem:[%s857_s25] sm:$0x1] %v3306_v25 }
0x16cb   : > { %4525 = shalt.err (!%p4522_p11)
}
0x16cc   : > { %s4526_s2 = scalar_lea.hbm %s5468_s10, 16  ;;  %s4530_s8 = scalar_lea.hbm %s5602_s9, 32 }
0x16cd   : > { %p4527_p0 = scmp.ne.s32.totalorder %s5468_s10, %s4526_s2  ;;  %p4531_p6 = scmp.lt.s32.totalorder %s5468_s10, %s5602_s9 }
0x16ce   : > { %p4532_p12 = scmp.lt.s32.totalorder %s4530_s8, %s4526_s2 }
0x16cf   : > { %p4528_p1 = pnand %p4527_p0, %p5603_p3 }
0x16d0   : > { %p4533_p7 = por %p4532_p12, %p4531_p6 }
0x16d1   : > { %p4529_p9 = pneg %p4528_p1 }
0x16d3   : > { %p4534_p13 = pnand %p4533_p7, %p4529_p9 }
0x16d5   : > { %4537 = shalt.err (!%p4534_p13)
}
0x16d6   : > { %3946 = dma.vmem_to_hbm [thread:$0]  (%p5603_p3), %s3324_s20, 16, %s5468_s10, %s3311_s26  }
0x16d7 PF: > { %s3335_s7 = sand.u32 1, %s4596_s1   ;;  %p5604_p4 = scmp.ne.s32.totalorder %s5575_s30, 0 }
0x16d8   : > { %p5605_p2 = scmp.ge.s32.totalorder %s4608_s24, 2  ;;  %s3336_s3 = scalar_lea.sflag [#allocation4], %s3335_s7 }
0x16da   : > { %p3996_p5 = pnand %p5605_p2, %p5604_p4 }
0x16dc   : > { %p3997_p8 = pneg %p3996_p5 }
0x16de   : > { %4591 = dma.done.wait (%p3997_p8), %s3336_s3, 16  }
0x16df   : > { %4593 = vsyncadd (%p3997_p8), %s3336_s3, 4294967280  ;;  %p42_p10 = scmp.ge.s32.totalorder %s4914_s4, 4   ;;  %s5606_s1 = smov %s4600_s22 }
0x16e0   : > { %s5607_s22 = smov %s4604_s23  ;;  %s5608_s23 = smov %s4926_s27 }
0x16e1   : > { %s5609_s24 = smov %s4914_s4  ;;  %44 = sbr.rel (!%p42_p10) target bundleno = 31 (0x1f), region = 222 }
0x16e6   :  { %3340 = vsyncpa [#allocation3], 1 }
0x16e7   :  { %3342 = vsyncpa [#allocation3 + $0x1], 1 }
0x16e8   :  { %3343 = vsyncpa [#allocation6], 1 }
0x16e9   :  { %3345 = vsyncpa [#allocation6 + $0x1], 1 }
0x16ea   :  { %3346 = vsyncpa [#allocation9], 1 }
0x16eb   :  { %3347 = vsyncpa [#allocation12], 1 }
0x16ec   :  { %3348 = vsyncpa [#allocation15], 1 }
0x16ed   :  { %3349 = vsyncpa [#allocation18], 1 }
0x16ee   :  { %3350 = vsyncpa [#allocation21], 1 }
0x16ef   :  { %3351 = vsyncpa [#allocation24], 1 }
0x16f0   :  { %3352 = vsyncpa [#allocation4], 1 }
0x16f1   :  { %3354 = vsyncpa [#allocation4 + $0x1], 1 }

</bundles_post_ra>
